<compile_context>
chip_gen: v5e
topology: v5e:2x2
jax: 0.10.0
libtpu: 0.0.40
codegen_flags: <defaults>
</compile_context>

<pallas_src>
import math
from functools import partial

import jax
import jax.numpy as jnp
from jax import lax
from jax.experimental import pallas as pl
from jax.experimental.pallas import tpu as pltpu

EPS = 1e-5   # BatchNorm eps (PyTorch default)
LANE = 128


def _round_up(n, m):
    return ((n + m - 1) // m) * m


# ---------------------------------------------------------------------------
# Fused ResidualLayer kernel (one grid step per batch element)
# ---------------------------------------------------------------------------
def _residual_layer_kernel(xph_ref, w1_ref, w2_ref, wd_ref, aff_ref, o_ref,
                           hpad_ref, *, stride, Ho, Wo, Cin, Cp):
    s1 = aff_ref[0:1, :]
    b1 = aff_ref[1:2, :]
    s2 = aff_ref[2:3, :]
    b2 = aff_ref[3:4, :]
    sd = aff_ref[4:5, :]
    bd = aff_ref[5:6, :]

    M = Ho * Wo
    taps = [(dy, dx) for dy in range(3) for dx in range(3)]

    def tap_view(dy, dx):
        # x_pad[b, dy + stride*i, dx + stride*j, :] via the phase decomposition
        ph = (dy % stride) * stride + (dx % stride)
        oy, ox = dy // stride, dx // stride
        return xph_ref[ph, 0, oy:oy + Ho, ox:ox + Wo, :].reshape(M, Cin)

    # ---- conv1 (3x3, stride) + folded BN1 + ReLU --------------------------
    acc1 = jnp.zeros((M, Cp), jnp.float32)
    for t, (dy, dx) in enumerate(taps):
        acc1 = acc1 + jnp.dot(tap_view(dy, dx), w1_ref[t],
                              preferred_element_type=jnp.float32)
    h = jnp.maximum(acc1 * s1 + b1, 0.0)                       # [M, Cp] f32

    # stash h in a zero-padded VMEM scratch (halo for conv2, pad=1)
    hpad_ref[...] = jnp.zeros_like(hpad_ref)
    hpad_ref[1:Ho + 1, 1:Wo + 1, :] = h.reshape(Ho, Wo, Cp)

    # ---- residual branch: 1x1 stride-s conv (or identity) + folded BN -----
    res = jnp.dot(tap_view(1, 1), wd_ref[...],
                  preferred_element_type=jnp.float32) * sd + bd

    # ---- conv2 (3x3, stride 1, pad 1) + folded BN2 + residual add + ReLU --
    acc2 = jnp.zeros((M, Cp), jnp.float32)
    for t, (dy, dx) in enumerate(taps):
        hs = hpad_ref[dy:dy + Ho, dx:dx + Wo, :].reshape(M, Cp)
        acc2 = acc2 + jnp.dot(hs.astype(jnp.bfloat16), w2_ref[t],
                              preferred_element_type=jnp.float32)
    y = jnp.maximum(acc2 * s2 + b2 + res, 0.0)
    o_ref[...] = y.reshape(1, Ho, Wo, Cp)


# ---------------------------------------------------------------------------
# Wrapper: parameter packing (BN fold, lane padding, bf16) + pallas_call
# ---------------------------------------------------------------------------
def _conv_w_taps(w):
    """PyTorch conv weight [Cout, Cin, kh, kw] -> [kh*kw, Cin, Cout]."""
    Cout, Cin, kh, kw = w.shape
    return jnp.transpose(w, (2, 3, 1, 0)).reshape(kh * kw, Cin, Cout)


def _fold_bn(conv_bias, bn):
    scale = bn["gamma"] / jnp.sqrt(bn["var"] + EPS)
    shift = (conv_bias - bn["mean"]) * scale + bn["beta"]
    return scale, shift


def _pad_lane(a, cp):
    pad = cp - a.shape[-1]
    if pad == 0:
        return a
    widths = [(0, 0)] * (a.ndim - 1) + [(0, pad)]
    return jnp.pad(a, widths)


def residual_layer_forward(x_nchw, p):
    stride = p["stride"]
    x = jnp.transpose(x_nchw, (0, 2, 3, 1)).astype(jnp.float32)     # NHWC
    B, H, W, Cin = x.shape
    Cout = p["conv1"]["w"].shape[0]
    Cp = _round_up(Cout, LANE)

    Hp, Wp = H + 2, W + 2
    Ho = (Hp - 3) // stride + 1
    Wo = (Wp - 3) // stride + 1
    Hq = 2 // stride + Ho
    Wq = 2 // stride + Wo

    # Phase-decomposed, spatially padded input (same total bytes as x; avoids
    # the 9x im2col HBM blowup).  Taps become unit-stride slices in-kernel.
    x_pad = jnp.pad(x, ((0, 0), (1, 1), (1, 1), (0, 0)))
    phases = []
    for py in range(stride):
        for px in range(stride):
            ph = x_pad[:, py::stride, px::stride, :][:, :Hq, :Wq, :]
            ph = jnp.pad(ph, ((0, 0), (0, Hq - ph.shape[1]),
                              (0, Wq - ph.shape[2]), (0, 0)))
            phases.append(ph)
    xph = jnp.stack(phases, axis=0).astype(jnp.bfloat16)   # [s*s, B, Hq, Wq, Cin]

    # Weights as per-tap matmul matrices; BN folded; lane (Cout) dim 0-padded
    # to 128 so all stores are lane-dense; bf16 for the MXU.
    w1 = _pad_lane(_conv_w_taps(p["conv1"]["w"]), Cp).astype(jnp.bfloat16)
    s1, b1 = _fold_bn(p["conv1"]["b"], p["bn1"])

    w2 = _conv_w_taps(p["conv2"]["w"])                       # [9, Cout, Cout]
    w2 = jnp.pad(w2, ((0, 0), (0, Cp - Cout), (0, Cp - Cout))).astype(jnp.bfloat16)
    s2, b2 = _fold_bn(p["conv2"]["b"], p["bn2"])

    if p["down_conv"] is not None:
        wd = _conv_w_taps(p["down_conv"]["w"])[0]            # [Cin, Cout]
        sd, bd = _fold_bn(p["down_conv"]["b"], p["down_bn"])
    else:
        # TODO(synk): identity residual is routed through the MXU in bf16
        # (exact up to bf16 rounding of x); PyTorch adds x in f32.
        wd = jnp.eye(Cin, Cout, dtype=jnp.float32)
        sd = jnp.ones((Cout,), jnp.float32)
        bd = jnp.zeros((Cout,), jnp.float32)
    wd = _pad_lane(wd, Cp).astype(jnp.bfloat16)

    aff = jnp.stack([_pad_lane(v.astype(jnp.float32), Cp)
                     for v in (s1, b1, s2, b2, sd, bd)], axis=0)     # [6, Cp]

    S2 = stride * stride
    kernel = partial(_residual_layer_kernel, stride=stride,
                     Ho=Ho, Wo=Wo, Cin=Cin, Cp=Cp)

    out = pl.pallas_call(
        kernel,
        out_shape=jax.ShapeDtypeStruct((B, Ho, Wo, Cp), jnp.float32),
        grid=(B,),
        in_specs=[
            pl.BlockSpec((S2, 1, Hq, Wq, Cin), lambda b: (0, b, 0, 0, 0)),
            pl.BlockSpec((9, Cin, Cp), lambda b: (0, 0, 0)),
            pl.BlockSpec((9, Cp, Cp), lambda b: (0, 0, 0)),
            pl.BlockSpec((Cin, Cp), lambda b: (0, 0)),
            pl.BlockSpec((6, Cp), lambda b: (0, 0)),
        ],
        out_specs=pl.BlockSpec((1, Ho, Wo, Cp), lambda b: (b, 0, 0, 0)),
        scratch_shapes=[pltpu.VMEM((Ho + 2, Wo + 2, Cp), jnp.float32)],
        compiler_params=pltpu.CompilerParams(
            dimension_semantics=("parallel",)),   # v7x: one image per TensorCore
    )(xph, w1, w2, wd, aff)

    out = out[:, :, :, :Cout]                     # drop lane padding
    return jnp.transpose(out, (0, 3, 1, 2))       # NHWC -> NCHW (PyTorch layout)


# ---------------------------------------------------------------------------
# Pure-JAX reference (eval-mode BN) for a correctness sanity check
# ---------------------------------------------------------------------------
def _conv2d(x_nhwc, w_oihw, b, stride, pad):
    y = lax.conv_general_dilated(
        x_nhwc, jnp.transpose(w_oihw, (2, 3, 1, 0)),
        window_strides=(stride, stride), padding=((pad, pad), (pad, pad)),
        dimension_numbers=("NHWC", "HWIO", "NHWC"),
        precision=lax.Precision.HIGHEST)
    return y + b


def _bn_eval(x, bn):
    return (x - bn["mean"]) * bn["gamma"] / jnp.sqrt(bn["var"] + EPS) + bn["beta"]


def residual_layer_reference(x_nchw, p):
    x = jnp.transpose(x_nchw, (0, 2, 3, 1)).astype(jnp.float32)
    stride = p["stride"]
    if p["down_conv"] is not None:
        residual = _bn_eval(
            _conv2d(x, p["down_conv"]["w"], p["down_conv"]["b"], stride, 0),
            p["down_bn"])
    else:
        residual = x
    h = jax.nn.relu(_bn_eval(
        _conv2d(x, p["conv1"]["w"], p["conv1"]["b"], stride, 1), p["bn1"]))
    y = _bn_eval(_conv2d(h, p["conv2"]["w"], p["conv2"]["b"], 1, 1), p["bn2"])
    return jnp.transpose(jax.nn.relu(y + residual), (0, 3, 1, 2))


# ---------------------------------------------------------------------------
# Deterministic parameter init (shapes from the PyTorch __init__)
# ---------------------------------------------------------------------------
def init_conv(key, cin, cout, k):
    k1, k2 = jax.random.split(key)
    bound = 1.0 / math.sqrt(cin * k * k)
    return {"w": jax.random.uniform(k1, (cout, cin, k, k), jnp.float32, -bound, bound),
            "b": jax.random.uniform(k2, (cout,), jnp.float32, -bound, bound)}


def init_bn(key, c):
    k1, k2, k3, k4 = jax.random.split(key, 4)
    return {"gamma": 1.0 + 0.1 * jax.random.normal(k1, (c,), jnp.float32),
            "beta": 0.1 * jax.random.normal(k2, (c,), jnp.float32),
            "mean": 0.1 * jax.random.normal(k3, (c,), jnp.float32),
            "var": 1.0 + 0.1 * jax.random.uniform(k4, (c,), jnp.float32)}


def init_residual_layer(key, cin, cout, stride):
    ks = jax.random.split(key, 6)
    p = {"conv1": init_conv(ks[0], cin, cout, 3), "bn1": init_bn(ks[1], cout),
         "conv2": init_conv(ks[2], cout, cout, 3), "bn2": init_bn(ks[3], cout),
         "stride": stride, "down_conv": None, "down_bn": None}
    if stride != 1 or cin != cout:
        p["down_conv"] = init_conv(ks[4], cin, cout, 1)
        p["down_bn"] = init_bn(ks[5], cout)
    return p


if __name__ == "__main__":
    key = jax.random.PRNGKey(0)
    pkey, xkey = jax.random.split(key)

    batch, cin, cout, hw, stride = 2, 4, 8, 16, 2
    params = init_residual_layer(pkey, cin, cout, stride)
    x = jax.random.normal(xkey, (batch, cin, hw, hw), jnp.float32)   # NCHW

    out = residual_layer_forward(x, params)
    jax.block_until_ready(out)

    assert out.shape == (batch, cout, hw // stride, hw // stride), out.shape
    assert bool(jnp.all(jnp.isfinite(out)))

    ref = residual_layer_reference(x, params)
    err = float(jnp.max(jnp.abs(out - ref)))
    assert err < 5e-2, f"max abs err {err}"
    print("KERNEL_OK")
</pallas_src>

<mosaic_0001>
module attributes {stable_mosaic.version = 11 : i64} {
  func.func @_residual_layer_kernel(%arg0: i32, %arg1: memref<4x1x9x9x4xbf16, #tpu.memory_space<vmem>>, %arg2: memref<9x4x128xbf16, #tpu.memory_space<vmem>>, %arg3: memref<9x128x128xbf16, #tpu.memory_space<vmem>>, %arg4: memref<4x128xbf16, #tpu.memory_space<vmem>>, %arg5: memref<6x128xf32, #tpu.memory_space<vmem>>, %arg6: memref<1x8x8x128xf32, #tpu.memory_space<vmem>>, %arg7: memref<10x10x128xf32, #tpu.memory_space<vmem>>) attributes {dimension_semantics = [#tpu.dimension_semantics<parallel>], iteration_bounds = array<i64: 2>, scalar_prefetch = 0 : i64, scratch_operands = 1 : i64, tpu.core_type = #tpu.core_type<tc>, window_params = [{transform_indices = @transform_0, window_bounds = array<i64: 4, 1, 9, 9, 4>}, {pipeline_mode = #tpu.pipeline_mode<synchronous>, transform_indices = @transform_1, window_bounds = array<i64: 9, 4, 128>}, {pipeline_mode = #tpu.pipeline_mode<synchronous>, transform_indices = @transform_2, window_bounds = array<i64: 9, 128, 128>}, {pipeline_mode = #tpu.pipeline_mode<synchronous>, transform_indices = @transform_3, window_bounds = array<i64: 4, 128>}, {pipeline_mode = #tpu.pipeline_mode<synchronous>, transform_indices = @transform_4, window_bounds = array<i64: 6, 128>}, {transform_indices = @transform_5, window_bounds = array<i64: 1, 8, 8, 128>}]} {
    %c0 = arith.constant 0 : index
    %c0_0 = arith.constant 0 : index
    %0 = vector.load %arg5[%c0, %c0_0] : memref<6x128xf32, #tpu.memory_space<vmem>>, vector<1x128xf32>
    %c1 = arith.constant 1 : index
    %c0_1 = arith.constant 0 : index
    %1 = vector.load %arg5[%c1, %c0_1] : memref<6x128xf32, #tpu.memory_space<vmem>>, vector<1x128xf32>
    %c2 = arith.constant 2 : index
    %c0_2 = arith.constant 0 : index
    %2 = vector.load %arg5[%c2, %c0_2] : memref<6x128xf32, #tpu.memory_space<vmem>>, vector<1x128xf32>
    %c3 = arith.constant 3 : index
    %c0_3 = arith.constant 0 : index
    %3 = vector.load %arg5[%c3, %c0_3] : memref<6x128xf32, #tpu.memory_space<vmem>>, vector<1x128xf32>
    %c4 = arith.constant 4 : index
    %c0_4 = arith.constant 0 : index
    %4 = vector.load %arg5[%c4, %c0_4] : memref<6x128xf32, #tpu.memory_space<vmem>>, vector<1x128xf32>
    %c5 = arith.constant 5 : index
    %c0_5 = arith.constant 0 : index
    %5 = vector.load %arg5[%c5, %c0_5] : memref<6x128xf32, #tpu.memory_space<vmem>>, vector<1x128xf32>
    %cst = arith.constant 0.000000e+00 : f32
    %6 = vector.broadcast %cst : f32 to vector<64x128xf32>
    %c0_6 = arith.constant 0 : index
    %c0_7 = arith.constant 0 : index
    %c0_8 = arith.constant 0 : index
    %c0_9 = arith.constant 0 : index
    %c0_10 = arith.constant 0 : index
    %7 = vector.load %arg1[%c0_6, %c0_7, %c0_8, %c0_9, %c0_10] : memref<4x1x9x9x4xbf16, #tpu.memory_space<vmem>>, vector<1x1x8x8x4xbf16>
    %8 = vector.shape_cast %7 : vector<1x1x8x8x4xbf16> to vector<8x8x4xbf16>
    %9 = vector.shape_cast %8 : vector<8x8x4xbf16> to vector<64x4xbf16>
    %c0_11 = arith.constant 0 : index
    %c0_12 = arith.constant 0 : index
    %c0_13 = arith.constant 0 : index
    %10 = vector.load %arg2[%c0_11, %c0_12, %c0_13] : memref<9x4x128xbf16, #tpu.memory_space<vmem>>, vector<1x4x128xbf16>
    %11 = vector.shape_cast %10 : vector<1x4x128xbf16> to vector<4x128xbf16>
    %cst_14 = arith.constant dense<0.000000e+00> : vector<64x128xf32>
    %12 = tpu.matmul %9, %11, %cst_14 {dimension_numbers = #tpu.dot_dimension_numbers<[1], [0], [0], [1], [0, 0, 1, 1], [], []>} : vector<64x4xbf16>, vector<4x128xbf16>, vector<64x128xf32> -> vector<64x128xf32>
    %13 = arith.addf %6, %12 : vector<64x128xf32>
    %c1_15 = arith.constant 1 : index
    %c0_16 = arith.constant 0 : index
    %c0_17 = arith.constant 0 : index
    %c0_18 = arith.constant 0 : index
    %c0_19 = arith.constant 0 : index
    %14 = vector.load %arg1[%c1_15, %c0_16, %c0_17, %c0_18, %c0_19] : memref<4x1x9x9x4xbf16, #tpu.memory_space<vmem>>, vector<1x1x8x8x4xbf16>
    %15 = vector.shape_cast %14 : vector<1x1x8x8x4xbf16> to vector<8x8x4xbf16>
    %16 = vector.shape_cast %15 : vector<8x8x4xbf16> to vector<64x4xbf16>
    %c1_20 = arith.constant 1 : index
    %c0_21 = arith.constant 0 : index
    %c0_22 = arith.constant 0 : index
    %17 = vector.load %arg2[%c1_20, %c0_21, %c0_22] : memref<9x4x128xbf16, #tpu.memory_space<vmem>>, vector<1x4x128xbf16>
    %18 = vector.shape_cast %17 : vector<1x4x128xbf16> to vector<4x128xbf16>
    %cst_23 = arith.constant dense<0.000000e+00> : vector<64x128xf32>
    %19 = tpu.matmul %16, %18, %cst_23 {dimension_numbers = #tpu.dot_dimension_numbers<[1], [0], [0], [1], [0, 0, 1, 1], [], []>} : vector<64x4xbf16>, vector<4x128xbf16>, vector<64x128xf32> -> vector<64x128xf32>
    %20 = arith.addf %13, %19 : vector<64x128xf32>
    %c0_24 = arith.constant 0 : index
    %c0_25 = arith.constant 0 : index
    %c0_26 = arith.constant 0 : index
    %c1_27 = arith.constant 1 : index
    %c0_28 = arith.constant 0 : index
    %21 = vector.load %arg1[%c0_24, %c0_25, %c0_26, %c1_27, %c0_28] : memref<4x1x9x9x4xbf16, #tpu.memory_space<vmem>>, vector<1x1x8x8x4xbf16>
    %22 = vector.shape_cast %21 : vector<1x1x8x8x4xbf16> to vector<8x8x4xbf16>
    %23 = vector.shape_cast %22 : vector<8x8x4xbf16> to vector<64x4xbf16>
    %c2_29 = arith.constant 2 : index
    %c0_30 = arith.constant 0 : index
    %c0_31 = arith.constant 0 : index
    %24 = vector.load %arg2[%c2_29, %c0_30, %c0_31] : memref<9x4x128xbf16, #tpu.memory_space<vmem>>, vector<1x4x128xbf16>
    %25 = vector.shape_cast %24 : vector<1x4x128xbf16> to vector<4x128xbf16>
    %cst_32 = arith.constant dense<0.000000e+00> : vector<64x128xf32>
    %26 = tpu.matmul %23, %25, %cst_32 {dimension_numbers = #tpu.dot_dimension_numbers<[1], [0], [0], [1], [0, 0, 1, 1], [], []>} : vector<64x4xbf16>, vector<4x128xbf16>, vector<64x128xf32> -> vector<64x128xf32>
    %27 = arith.addf %20, %26 : vector<64x128xf32>
    %c2_33 = arith.constant 2 : index
    %c0_34 = arith.constant 0 : index
    %c0_35 = arith.constant 0 : index
    %c0_36 = arith.constant 0 : index
    %c0_37 = arith.constant 0 : index
    %28 = vector.load %arg1[%c2_33, %c0_34, %c0_35, %c0_36, %c0_37] : memref<4x1x9x9x4xbf16, #tpu.memory_space<vmem>>, vector<1x1x8x8x4xbf16>
    %29 = vector.shape_cast %28 : vector<1x1x8x8x4xbf16> to vector<8x8x4xbf16>
    %30 = vector.shape_cast %29 : vector<8x8x4xbf16> to vector<64x4xbf16>
    %c3_38 = arith.constant 3 : index
    %c0_39 = arith.constant 0 : index
    %c0_40 = arith.constant 0 : index
    %31 = vector.load %arg2[%c3_38, %c0_39, %c0_40] : memref<9x4x128xbf16, #tpu.memory_space<vmem>>, vector<1x4x128xbf16>
    %32 = vector.shape_cast %31 : vector<1x4x128xbf16> to vector<4x128xbf16>
    %cst_41 = arith.constant dense<0.000000e+00> : vector<64x128xf32>
    %33 = tpu.matmul %30, %32, %cst_41 {dimension_numbers = #tpu.dot_dimension_numbers<[1], [0], [0], [1], [0, 0, 1, 1], [], []>} : vector<64x4xbf16>, vector<4x128xbf16>, vector<64x128xf32> -> vector<64x128xf32>
    %34 = arith.addf %27, %33 : vector<64x128xf32>
    %c3_42 = arith.constant 3 : index
    %c0_43 = arith.constant 0 : index
    %c0_44 = arith.constant 0 : index
    %c0_45 = arith.constant 0 : index
    %c0_46 = arith.constant 0 : index
    %35 = vector.load %arg1[%c3_42, %c0_43, %c0_44, %c0_45, %c0_46] : memref<4x1x9x9x4xbf16, #tpu.memory_space<vmem>>, vector<1x1x8x8x4xbf16>
    %36 = vector.shape_cast %35 : vector<1x1x8x8x4xbf16> to vector<8x8x4xbf16>
    %37 = vector.shape_cast %36 : vector<8x8x4xbf16> to vector<64x4xbf16>
    %c4_47 = arith.constant 4 : index
    %c0_48 = arith.constant 0 : index
    %c0_49 = arith.constant 0 : index
    %38 = vector.load %arg2[%c4_47, %c0_48, %c0_49] : memref<9x4x128xbf16, #tpu.memory_space<vmem>>, vector<1x4x128xbf16>
    %39 = vector.shape_cast %38 : vector<1x4x128xbf16> to vector<4x128xbf16>
    %cst_50 = arith.constant dense<0.000000e+00> : vector<64x128xf32>
    %40 = tpu.matmul %37, %39, %cst_50 {dimension_numbers = #tpu.dot_dimension_numbers<[1], [0], [0], [1], [0, 0, 1, 1], [], []>} : vector<64x4xbf16>, vector<4x128xbf16>, vector<64x128xf32> -> vector<64x128xf32>
    %41 = arith.addf %34, %40 : vector<64x128xf32>
    %c2_51 = arith.constant 2 : index
    %c0_52 = arith.constant 0 : index
    %c0_53 = arith.constant 0 : index
    %c1_54 = arith.constant 1 : index
    %c0_55 = arith.constant 0 : index
    %42 = vector.load %arg1[%c2_51, %c0_52, %c0_53, %c1_54, %c0_55] : memref<4x1x9x9x4xbf16, #tpu.memory_space<vmem>>, vector<1x1x8x8x4xbf16>
    %43 = vector.shape_cast %42 : vector<1x1x8x8x4xbf16> to vector<8x8x4xbf16>
    %44 = vector.shape_cast %43 : vector<8x8x4xbf16> to vector<64x4xbf16>
    %c5_56 = arith.constant 5 : index
    %c0_57 = arith.constant 0 : index
    %c0_58 = arith.constant 0 : index
    %45 = vector.load %arg2[%c5_56, %c0_57, %c0_58] : memref<9x4x128xbf16, #tpu.memory_space<vmem>>, vector<1x4x128xbf16>
    %46 = vector.shape_cast %45 : vector<1x4x128xbf16> to vector<4x128xbf16>
    %cst_59 = arith.constant dense<0.000000e+00> : vector<64x128xf32>
    %47 = tpu.matmul %44, %46, %cst_59 {dimension_numbers = #tpu.dot_dimension_numbers<[1], [0], [0], [1], [0, 0, 1, 1], [], []>} : vector<64x4xbf16>, vector<4x128xbf16>, vector<64x128xf32> -> vector<64x128xf32>
    %48 = arith.addf %41, %47 : vector<64x128xf32>
    %c0_60 = arith.constant 0 : index
    %c0_61 = arith.constant 0 : index
    %c1_62 = arith.constant 1 : index
    %c0_63 = arith.constant 0 : index
    %c0_64 = arith.constant 0 : index
    %49 = vector.load %arg1[%c0_60, %c0_61, %c1_62, %c0_63, %c0_64] : memref<4x1x9x9x4xbf16, #tpu.memory_space<vmem>>, vector<1x1x8x8x4xbf16>
    %50 = vector.shape_cast %49 : vector<1x1x8x8x4xbf16> to vector<8x8x4xbf16>
    %51 = vector.shape_cast %50 : vector<8x8x4xbf16> to vector<64x4xbf16>
    %c6 = arith.constant 6 : index
    %c0_65 = arith.constant 0 : index
    %c0_66 = arith.constant 0 : index
    %52 = vector.load %arg2[%c6, %c0_65, %c0_66] : memref<9x4x128xbf16, #tpu.memory_space<vmem>>, vector<1x4x128xbf16>
    %53 = vector.shape_cast %52 : vector<1x4x128xbf16> to vector<4x128xbf16>
    %cst_67 = arith.constant dense<0.000000e+00> : vector<64x128xf32>
    %54 = tpu.matmul %51, %53, %cst_67 {dimension_numbers = #tpu.dot_dimension_numbers<[1], [0], [0], [1], [0, 0, 1, 1], [], []>} : vector<64x4xbf16>, vector<4x128xbf16>, vector<64x128xf32> -> vector<64x128xf32>
    %55 = arith.addf %48, %54 : vector<64x128xf32>
    %c1_68 = arith.constant 1 : index
    %c0_69 = arith.constant 0 : index
    %c1_70 = arith.constant 1 : index
    %c0_71 = arith.constant 0 : index
    %c0_72 = arith.constant 0 : index
    %56 = vector.load %arg1[%c1_68, %c0_69, %c1_70, %c0_71, %c0_72] : memref<4x1x9x9x4xbf16, #tpu.memory_space<vmem>>, vector<1x1x8x8x4xbf16>
    %57 = vector.shape_cast %56 : vector<1x1x8x8x4xbf16> to vector<8x8x4xbf16>
    %58 = vector.shape_cast %57 : vector<8x8x4xbf16> to vector<64x4xbf16>
    %c7 = arith.constant 7 : index
    %c0_73 = arith.constant 0 : index
    %c0_74 = arith.constant 0 : index
    %59 = vector.load %arg2[%c7, %c0_73, %c0_74] : memref<9x4x128xbf16, #tpu.memory_space<vmem>>, vector<1x4x128xbf16>
    %60 = vector.shape_cast %59 : vector<1x4x128xbf16> to vector<4x128xbf16>
    %cst_75 = arith.constant dense<0.000000e+00> : vector<64x128xf32>
    %61 = tpu.matmul %58, %60, %cst_75 {dimension_numbers = #tpu.dot_dimension_numbers<[1], [0], [0], [1], [0, 0, 1, 1], [], []>} : vector<64x4xbf16>, vector<4x128xbf16>, vector<64x128xf32> -> vector<64x128xf32>
    %62 = arith.addf %55, %61 : vector<64x128xf32>
    %c0_76 = arith.constant 0 : index
    %c0_77 = arith.constant 0 : index
    %c1_78 = arith.constant 1 : index
    %c1_79 = arith.constant 1 : index
    %c0_80 = arith.constant 0 : index
    %63 = vector.load %arg1[%c0_76, %c0_77, %c1_78, %c1_79, %c0_80] : memref<4x1x9x9x4xbf16, #tpu.memory_space<vmem>>, vector<1x1x8x8x4xbf16>
    %64 = vector.shape_cast %63 : vector<1x1x8x8x4xbf16> to vector<8x8x4xbf16>
    %65 = vector.shape_cast %64 : vector<8x8x4xbf16> to vector<64x4xbf16>
    %c8 = arith.constant 8 : index
    %c0_81 = arith.constant 0 : index
    %c0_82 = arith.constant 0 : index
    %66 = vector.load %arg2[%c8, %c0_81, %c0_82] : memref<9x4x128xbf16, #tpu.memory_space<vmem>>, vector<1x4x128xbf16>
    %67 = vector.shape_cast %66 : vector<1x4x128xbf16> to vector<4x128xbf16>
    %cst_83 = arith.constant dense<0.000000e+00> : vector<64x128xf32>
    %68 = tpu.matmul %65, %67, %cst_83 {dimension_numbers = #tpu.dot_dimension_numbers<[1], [0], [0], [1], [0, 0, 1, 1], [], []>} : vector<64x4xbf16>, vector<4x128xbf16>, vector<64x128xf32> -> vector<64x128xf32>
    %69 = arith.addf %62, %68 : vector<64x128xf32>
    %70 = vector.broadcast %0 : vector<1x128xf32> to vector<64x128xf32>
    %71 = arith.mulf %69, %70 : vector<64x128xf32>
    %72 = vector.broadcast %1 : vector<1x128xf32> to vector<64x128xf32>
    %73 = arith.addf %71, %72 : vector<64x128xf32>
    %cst_84 = arith.constant 0.000000e+00 : f32
    %74 = vector.broadcast %cst_84 : f32 to vector<64x128xf32>
    %75 = arith.maximumf %73, %74 : vector<64x128xf32>
    %cst_85 = arith.constant 0.000000e+00 : f32
    %76 = vector.broadcast %cst_85 : f32 to vector<10x10x128xf32>
    %c0_86 = arith.constant 0 : index
    %c0_87 = arith.constant 0 : index
    %c0_88 = arith.constant 0 : index
    %77 = vector.load %arg7[%c0_86, %c0_87, %c0_88] : memref<10x10x128xf32, #tpu.memory_space<vmem>>, vector<10x10x128xf32>
    tpu.vector_store %arg7[%c0_86, %c0_87, %c0_88], %76 {strides = array<i32>} : memref<10x10x128xf32, #tpu.memory_space<vmem>>, vector<10x10x128xf32>,
    %78 = vector.shape_cast %75 : vector<64x128xf32> to vector<8x8x128xf32>
    %c1_89 = arith.constant 1 : index
    %c1_90 = arith.constant 1 : index
    %c0_91 = arith.constant 0 : index
    %79 = vector.load %arg7[%c1_89, %c1_90, %c0_91] : memref<10x10x128xf32, #tpu.memory_space<vmem>>, vector<8x8x128xf32>
    tpu.vector_store %arg7[%c1_89, %c1_90, %c0_91], %78 {strides = array<i32>} : memref<10x10x128xf32, #tpu.memory_space<vmem>>, vector<8x8x128xf32>,
    %c3_92 = arith.constant 3 : index
    %c0_93 = arith.constant 0 : index
    %c0_94 = arith.constant 0 : index
    %c0_95 = arith.constant 0 : index
    %c0_96 = arith.constant 0 : index
    %80 = vector.load %arg1[%c3_92, %c0_93, %c0_94, %c0_95, %c0_96] : memref<4x1x9x9x4xbf16, #tpu.memory_space<vmem>>, vector<1x1x8x8x4xbf16>
    %81 = vector.shape_cast %80 : vector<1x1x8x8x4xbf16> to vector<8x8x4xbf16>
    %82 = vector.shape_cast %81 : vector<8x8x4xbf16> to vector<64x4xbf16>
    %c0_97 = arith.constant 0 : index
    %c0_98 = arith.constant 0 : index
    %83 = vector.load %arg4[%c0_97, %c0_98] : memref<4x128xbf16, #tpu.memory_space<vmem>>, vector<4x128xbf16>
    %cst_99 = arith.constant dense<0.000000e+00> : vector<64x128xf32>
    %84 = tpu.matmul %82, %83, %cst_99 {dimension_numbers = #tpu.dot_dimension_numbers<[1], [0], [0], [1], [0, 0, 1, 1], [], []>} : vector<64x4xbf16>, vector<4x128xbf16>, vector<64x128xf32> -> vector<64x128xf32>
    %85 = vector.broadcast %4 : vector<1x128xf32> to vector<64x128xf32>
    %86 = arith.mulf %84, %85 : vector<64x128xf32>
    %87 = vector.broadcast %5 : vector<1x128xf32> to vector<64x128xf32>
    %88 = arith.addf %86, %87 : vector<64x128xf32>
    %cst_100 = arith.constant 0.000000e+00 : f32
    %89 = vector.broadcast %cst_100 : f32 to vector<64x128xf32>
    %c0_101 = arith.constant 0 : index
    %c0_102 = arith.constant 0 : index
    %c0_103 = arith.constant 0 : index
    %90 = vector.load %arg7[%c0_101, %c0_102, %c0_103] : memref<10x10x128xf32, #tpu.memory_space<vmem>>, vector<8x8x128xf32>
    %91 = vector.shape_cast %90 : vector<8x8x128xf32> to vector<64x128xf32>
    %92 = arith.truncf %91 : vector<64x128xf32> to vector<64x128xbf16>
    %c0_104 = arith.constant 0 : index
    %c0_105 = arith.constant 0 : index
    %c0_106 = arith.constant 0 : index
    %93 = vector.load %arg3[%c0_104, %c0_105, %c0_106] : memref<9x128x128xbf16, #tpu.memory_space<vmem>>, vector<1x128x128xbf16>
    %94 = vector.shape_cast %93 : vector<1x128x128xbf16> to vector<128x128xbf16>
    %cst_107 = arith.constant dense<0.000000e+00> : vector<64x128xf32>
    %95 = tpu.matmul %92, %94, %cst_107 {dimension_numbers = #tpu.dot_dimension_numbers<[1], [0], [0], [1], [0, 0, 1, 1], [], []>} : vector<64x128xbf16>, vector<128x128xbf16>, vector<64x128xf32> -> vector<64x128xf32>
    %96 = arith.addf %89, %95 : vector<64x128xf32>
    %c0_108 = arith.constant 0 : index
    %c1_109 = arith.constant 1 : index
    %c0_110 = arith.constant 0 : index
    %97 = vector.load %arg7[%c0_108, %c1_109, %c0_110] : memref<10x10x128xf32, #tpu.memory_space<vmem>>, vector<8x8x128xf32>
    %98 = vector.shape_cast %97 : vector<8x8x128xf32> to vector<64x128xf32>
    %99 = arith.truncf %98 : vector<64x128xf32> to vector<64x128xbf16>
    %c1_111 = arith.constant 1 : index
    %c0_112 = arith.constant 0 : index
    %c0_113 = arith.constant 0 : index
    %100 = vector.load %arg3[%c1_111, %c0_112, %c0_113] : memref<9x128x128xbf16, #tpu.memory_space<vmem>>, vector<1x128x128xbf16>
    %101 = vector.shape_cast %100 : vector<1x128x128xbf16> to vector<128x128xbf16>
    %cst_114 = arith.constant dense<0.000000e+00> : vector<64x128xf32>
    %102 = tpu.matmul %99, %101, %cst_114 {dimension_numbers = #tpu.dot_dimension_numbers<[1], [0], [0], [1], [0, 0, 1, 1], [], []>} : vector<64x128xbf16>, vector<128x128xbf16>, vector<64x128xf32> -> vector<64x128xf32>
    %103 = arith.addf %96, %102 : vector<64x128xf32>
    %c0_115 = arith.constant 0 : index
    %c2_116 = arith.constant 2 : index
    %c0_117 = arith.constant 0 : index
    %104 = vector.load %arg7[%c0_115, %c2_116, %c0_117] : memref<10x10x128xf32, #tpu.memory_space<vmem>>, vector<8x8x128xf32>
    %105 = vector.shape_cast %104 : vector<8x8x128xf32> to vector<64x128xf32>
    %106 = arith.truncf %105 : vector<64x128xf32> to vector<64x128xbf16>
    %c2_118 = arith.constant 2 : index
    %c0_119 = arith.constant 0 : index
    %c0_120 = arith.constant 0 : index
    %107 = vector.load %arg3[%c2_118, %c0_119, %c0_120] : memref<9x128x128xbf16, #tpu.memory_space<vmem>>, vector<1x128x128xbf16>
    %108 = vector.shape_cast %107 : vector<1x128x128xbf16> to vector<128x128xbf16>
    %cst_121 = arith.constant dense<0.000000e+00> : vector<64x128xf32>
    %109 = tpu.matmul %106, %108, %cst_121 {dimension_numbers = #tpu.dot_dimension_numbers<[1], [0], [0], [1], [0, 0, 1, 1], [], []>} : vector<64x128xbf16>, vector<128x128xbf16>, vector<64x128xf32> -> vector<64x128xf32>
    %110 = arith.addf %103, %109 : vector<64x128xf32>
    %c1_122 = arith.constant 1 : index
    %c0_123 = arith.constant 0 : index
    %c0_124 = arith.constant 0 : index
    %111 = vector.load %arg7[%c1_122, %c0_123, %c0_124] : memref<10x10x128xf32, #tpu.memory_space<vmem>>, vector<8x8x128xf32>
    %112 = vector.shape_cast %111 : vector<8x8x128xf32> to vector<64x128xf32>
    %113 = arith.truncf %112 : vector<64x128xf32> to vector<64x128xbf16>
    %c3_125 = arith.constant 3 : index
    %c0_126 = arith.constant 0 : index
    %c0_127 = arith.constant 0 : index
    %114 = vector.load %arg3[%c3_125, %c0_126, %c0_127] : memref<9x128x128xbf16, #tpu.memory_space<vmem>>, vector<1x128x128xbf16>
    %115 = vector.shape_cast %114 : vector<1x128x128xbf16> to vector<128x128xbf16>
    %cst_128 = arith.constant dense<0.000000e+00> : vector<64x128xf32>
    %116 = tpu.matmul %113, %115, %cst_128 {dimension_numbers = #tpu.dot_dimension_numbers<[1], [0], [0], [1], [0, 0, 1, 1], [], []>} : vector<64x128xbf16>, vector<128x128xbf16>, vector<64x128xf32> -> vector<64x128xf32>
    %117 = arith.addf %110, %116 : vector<64x128xf32>
    %c1_129 = arith.constant 1 : index
    %c1_130 = arith.constant 1 : index
    %c0_131 = arith.constant 0 : index
    %118 = vector.load %arg7[%c1_129, %c1_130, %c0_131] : memref<10x10x128xf32, #tpu.memory_space<vmem>>, vector<8x8x128xf32>
    %119 = vector.shape_cast %118 : vector<8x8x128xf32> to vector<64x128xf32>
    %120 = arith.truncf %119 : vector<64x128xf32> to vector<64x128xbf16>
    %c4_132 = arith.constant 4 : index
    %c0_133 = arith.constant 0 : index
    %c0_134 = arith.constant 0 : index
    %121 = vector.load %arg3[%c4_132, %c0_133, %c0_134] : memref<9x128x128xbf16, #tpu.memory_space<vmem>>, vector<1x128x128xbf16>
    %122 = vector.shape_cast %121 : vector<1x128x128xbf16> to vector<128x128xbf16>
    %cst_135 = arith.constant dense<0.000000e+00> : vector<64x128xf32>
    %123 = tpu.matmul %120, %122, %cst_135 {dimension_numbers = #tpu.dot_dimension_numbers<[1], [0], [0], [1], [0, 0, 1, 1], [], []>} : vector<64x128xbf16>, vector<128x128xbf16>, vector<64x128xf32> -> vector<64x128xf32>
    %124 = arith.addf %117, %123 : vector<64x128xf32>
    %c1_136 = arith.constant 1 : index
    %c2_137 = arith.constant 2 : index
    %c0_138 = arith.constant 0 : index
    %125 = vector.load %arg7[%c1_136, %c2_137, %c0_138] : memref<10x10x128xf32, #tpu.memory_space<vmem>>, vector<8x8x128xf32>
    %126 = vector.shape_cast %125 : vector<8x8x128xf32> to vector<64x128xf32>
    %127 = arith.truncf %126 : vector<64x128xf32> to vector<64x128xbf16>
    %c5_139 = arith.constant 5 : index
    %c0_140 = arith.constant 0 : index
    %c0_141 = arith.constant 0 : index
    %128 = vector.load %arg3[%c5_139, %c0_140, %c0_141] : memref<9x128x128xbf16, #tpu.memory_space<vmem>>, vector<1x128x128xbf16>
    %129 = vector.shape_cast %128 : vector<1x128x128xbf16> to vector<128x128xbf16>
    %cst_142 = arith.constant dense<0.000000e+00> : vector<64x128xf32>
    %130 = tpu.matmul %127, %129, %cst_142 {dimension_numbers = #tpu.dot_dimension_numbers<[1], [0], [0], [1], [0, 0, 1, 1], [], []>} : vector<64x128xbf16>, vector<128x128xbf16>, vector<64x128xf32> -> vector<64x128xf32>
    %131 = arith.addf %124, %130 : vector<64x128xf32>
    %c2_143 = arith.constant 2 : index
    %c0_144 = arith.constant 0 : index
    %c0_145 = arith.constant 0 : index
    %132 = vector.load %arg7[%c2_143, %c0_144, %c0_145] : memref<10x10x128xf32, #tpu.memory_space<vmem>>, vector<8x8x128xf32>
    %133 = vector.shape_cast %132 : vector<8x8x128xf32> to vector<64x128xf32>
    %134 = arith.truncf %133 : vector<64x128xf32> to vector<64x128xbf16>
    %c6_146 = arith.constant 6 : index
    %c0_147 = arith.constant 0 : index
    %c0_148 = arith.constant 0 : index
    %135 = vector.load %arg3[%c6_146, %c0_147, %c0_148] : memref<9x128x128xbf16, #tpu.memory_space<vmem>>, vector<1x128x128xbf16>
    %136 = vector.shape_cast %135 : vector<1x128x128xbf16> to vector<128x128xbf16>
    %cst_149 = arith.constant dense<0.000000e+00> : vector<64x128xf32>
    %137 = tpu.matmul %134, %136, %cst_149 {dimension_numbers = #tpu.dot_dimension_numbers<[1], [0], [0], [1], [0, 0, 1, 1], [], []>} : vector<64x128xbf16>, vector<128x128xbf16>, vector<64x128xf32> -> vector<64x128xf32>
    %138 = arith.addf %131, %137 : vector<64x128xf32>
    %c2_150 = arith.constant 2 : index
    %c1_151 = arith.constant 1 : index
    %c0_152 = arith.constant 0 : index
    %139 = vector.load %arg7[%c2_150, %c1_151, %c0_152] : memref<10x10x128xf32, #tpu.memory_space<vmem>>, vector<8x8x128xf32>
    %140 = vector.shape_cast %139 : vector<8x8x128xf32> to vector<64x128xf32>
    %141 = arith.truncf %140 : vector<64x128xf32> to vector<64x128xbf16>
    %c7_153 = arith.constant 7 : index
    %c0_154 = arith.constant 0 : index
    %c0_155 = arith.constant 0 : index
    %142 = vector.load %arg3[%c7_153, %c0_154, %c0_155] : memref<9x128x128xbf16, #tpu.memory_space<vmem>>, vector<1x128x128xbf16>
    %143 = vector.shape_cast %142 : vector<1x128x128xbf16> to vector<128x128xbf16>
    %cst_156 = arith.constant dense<0.000000e+00> : vector<64x128xf32>
    %144 = tpu.matmul %141, %143, %cst_156 {dimension_numbers = #tpu.dot_dimension_numbers<[1], [0], [0], [1], [0, 0, 1, 1], [], []>} : vector<64x128xbf16>, vector<128x128xbf16>, vector<64x128xf32> -> vector<64x128xf32>
    %145 = arith.addf %138, %144 : vector<64x128xf32>
    %c2_157 = arith.constant 2 : index
    %c2_158 = arith.constant 2 : index
    %c0_159 = arith.constant 0 : index
    %146 = vector.load %arg7[%c2_157, %c2_158, %c0_159] : memref<10x10x128xf32, #tpu.memory_space<vmem>>, vector<8x8x128xf32>
    %147 = vector.shape_cast %146 : vector<8x8x128xf32> to vector<64x128xf32>
    %148 = arith.truncf %147 : vector<64x128xf32> to vector<64x128xbf16>
    %c8_160 = arith.constant 8 : index
    %c0_161 = arith.constant 0 : index
    %c0_162 = arith.constant 0 : index
    %149 = vector.load %arg3[%c8_160, %c0_161, %c0_162] : memref<9x128x128xbf16, #tpu.memory_space<vmem>>, vector<1x128x128xbf16>
    %150 = vector.shape_cast %149 : vector<1x128x128xbf16> to vector<128x128xbf16>
    %cst_163 = arith.constant dense<0.000000e+00> : vector<64x128xf32>
    %151 = tpu.matmul %148, %150, %cst_163 {dimension_numbers = #tpu.dot_dimension_numbers<[1], [0], [0], [1], [0, 0, 1, 1], [], []>} : vector<64x128xbf16>, vector<128x128xbf16>, vector<64x128xf32> -> vector<64x128xf32>
    %152 = arith.addf %145, %151 : vector<64x128xf32>
    %153 = vector.broadcast %2 : vector<1x128xf32> to vector<64x128xf32>
    %154 = arith.mulf %152, %153 : vector<64x128xf32>
    %155 = vector.broadcast %3 : vector<1x128xf32> to vector<64x128xf32>
    %156 = arith.addf %154, %155 : vector<64x128xf32>
    %157 = arith.addf %156, %88 : vector<64x128xf32>
    %cst_164 = arith.constant 0.000000e+00 : f32
    %158 = vector.broadcast %cst_164 : f32 to vector<64x128xf32>
    %159 = arith.maximumf %157, %158 : vector<64x128xf32>
    %160 = vector.shape_cast %159 : vector<64x128xf32> to vector<1x8x8x128xf32>
    %c0_165 = arith.constant 0 : index
    %c0_166 = arith.constant 0 : index
    %c0_167 = arith.constant 0 : index
    %c0_168 = arith.constant 0 : index
    %161 = vector.load %arg6[%c0_165, %c0_166, %c0_167, %c0_168] : memref<1x8x8x128xf32, #tpu.memory_space<vmem>>, vector<1x8x8x128xf32>
    tpu.vector_store %arg6[%c0_165, %c0_166, %c0_167, %c0_168], %160 {strides = array<i32>} : memref<1x8x8x128xf32, #tpu.memory_space<vmem>>, vector<1x8x8x128xf32>,
    return
  }
  func.func @transform_0(%arg0: i32) -> (i32, i32, i32, i32, i32) {
    %c0_i32 = arith.constant 0 : i32
    %c0_i32_0 = arith.constant 0 : i32
    %c0_i32_1 = arith.constant 0 : i32
    %c0_i32_2 = arith.constant 0 : i32
    %c0_i32_3 = arith.constant 0 : i32
    return %c0_i32, %arg0, %c0_i32_0, %c0_i32_1, %c0_i32_2 : i32, i32, i32, i32, i32
  }
  func.func @transform_1(%arg0: i32) -> (i32, i32, i32) {
    %c0_i32 = arith.constant 0 : i32
    %c0_i32_0 = arith.constant 0 : i32
    %c0_i32_1 = arith.constant 0 : i32
    %c0_i32_2 = arith.constant 0 : i32
    return %c0_i32, %c0_i32_0, %c0_i32_1 : i32, i32, i32
  }
  func.func @transform_2(%arg0: i32) -> (i32, i32, i32) {
    %c0_i32 = arith.constant 0 : i32
    %c0_i32_0 = arith.constant 0 : i32
    %c0_i32_1 = arith.constant 0 : i32
    %c0_i32_2 = arith.constant 0 : i32
    return %c0_i32, %c0_i32_0, %c0_i32_1 : i32, i32, i32
  }
  func.func @transform_3(%arg0: i32) -> (i32, i32) {
    %c0_i32 = arith.constant 0 : i32
    %c0_i32_0 = arith.constant 0 : i32
    %c0_i32_1 = arith.constant 0 : i32
    return %c0_i32, %c0_i32_0 : i32, i32
  }
  func.func @transform_4(%arg0: i32) -> (i32, i32) {
    %c0_i32 = arith.constant 0 : i32
    %c0_i32_0 = arith.constant 0 : i32
    %c0_i32_1 = arith.constant 0 : i32
    return %c0_i32, %c0_i32_0 : i32, i32
  }
  func.func @transform_5(%arg0: i32) -> (i32, i32, i32, i32) {
    %c0_i32 = arith.constant 0 : i32
    %c0_i32_0 = arith.constant 0 : i32
    %c0_i32_1 = arith.constant 0 : i32
    %c0_i32_2 = arith.constant 0 : i32
    return %arg0, %c0_i32, %c0_i32_0, %c0_i32_1 : i32, i32, i32, i32
  }
}

</mosaic_0001>

<bundles_post_ra>
// kernel: tpu_custom_call.1
= control target key start
LH: loop header
LB: loop body
LE: loop exit
PB: predicated region body
PF: predicated region fallthrough
CT: control target
= control target key end

     0   :  { %10 = vsyncpa [#allocation5], 0  ;;  %s4865_s0 = inlined_call_operand.vmem [shape: bf16[4,2,9,9,4], index: 0, kind: input, shape index: {}]   ;;  %s4866_s1 = inlined_call_operand.vmem [shape: bf16[9,4,128], index: 1, kind: input, shape index: {}]   ;;  %s4867_s2 = inlined_call_operand.vmem [shape: bf16[9,128,128], index: 2, kind: input, shape index: {}]   ;;  %s4868_s3 = inlined_call_operand.vmem [shape: bf16[4,128], index: 3, kind: input, shape index: {}]   ;;  %s4869_s4 = inlined_call_operand.vmem [shape: f32[6,128], index: 4, kind: input, shape index: {}]   ;;  %s4870_s5 = inlined_call_operand.hbm [shape: f32[2,8,8,128], index: 5, kind: output, shape index: {}]  }
   0x1   :  { %12 = vsyncpa [#allocation5 + $0x1], 0  ;;  %s3826_s18 = smov 0   ;;  %s3828_s19 = smov 0  }
   0x2   :  { %s3830_s20 = smov 0   ;;  %s3832_s21 = smov 0  }
   0x3 LB: > { %s2906_s22 = sadd.s32 4294967295, %s3791_s21   ;;  %s2907_s23 = sadd.s32 4294967294, %s3791_s21   ;;  %s3791_s21 = sphi %s3832_s21, %s4880_s21   ;;  %s3787_s20 = sphi %s3830_s20, %s4879_s20   ;;  %s3783_s19 = sphi %s3828_s19, %s4878_s19   ;;  %s3779_s18 = sphi %s3826_s18, %s4877_s18  }
   0x4   : > { %s3849_s24 = sadd.s32 1, %s3791_s21   ;;  %s25_s25 = sadd.s32 1, %s3787_s20 }
   0x5   : > { %s22_s26 = ssub.s32 %s3791_s21, %s3849_s24  ;;  %p32_p0 = scmp.ne.s32.totalorder %s3787_s20, %s3783_s19 }
   0x6   : > { %p23_p1 = scmp.eq.s32.totalorder %s22_s26, 0  ;;  %p33_p2 = scmp.eq.s32.totalorder %s3791_s21, 0 }
   0x7   : > { %p146_p3 = scmp.eq.s32.totalorder %s2906_s22, 1  ;;  %p151_p4 = scmp.ne.s32.totalorder %s3783_s19, %s3779_s18 }
   0x8   : > { %s3862_s27 = scalar_select %p23_p1, %s3787_s20, %s25_s25  }
   0x9   : > { %p34_p5 = por %p33_p2, %p32_p0  ;;  %p3864_p6 = por %p146_p3, %p32_p0 }
   0xa   : > { %p152_p7 = scmp.eq.s32.totalorder %s2907_s23, 1  ;;  %p2909_p9 = scmp.ge.s32.totalorder %s3791_s21, 2 }
   0xc   : > { %p3868_p8 = por %p152_p7, %p151_p4  ;;  %180 = sbr.rel (%p2909_p9) target bundleno = 58 (0x3a), region = 32 }
  0x11   : > { %183 = sbr.rel (!%p34_p5) target bundleno = 58 (0x3a), region = 36  ;;  %s185_s30 = sand.u32 (%p34_p5), 1, %s3787_s20  }
  0x12   : > { %s3679_s6 = smul.u32 (%p34_p5), 72, %s3791_s21 }
  0x13   : > { %s3678_s7 = smul.u32 (%p34_p5), 288, %s185_s30 }
  0x14   : > { %s3880_s10 = scalar_lea.vmem (%p34_p5), %s4865_s0, %s3679_s6 }
  0x15   : > { %v207_v0 = vld [vmem:[%s3880_s10] sm:$0xff] (%p34_p5)   ;;  %v211_v1 = vld [vmem:[%s3880_s10 + $0x8] sm:$0xff] (%p34_p5)   ;;  %v215_v2 = vld [vmem:[%s3880_s10 + $0x10] sm:$0xff] (%p34_p5)   ;;  %s3885_s11 = scalar_lea.vmem (%p34_p5), [#allocation3], %s3678_s7 }
  0x16   : > { %208 = vst [vmem:[%s3885_s11] sm:$0xff] %v207_v0   ;;  %v219_v3 = vld [vmem:[%s3880_s10 + $0x18] sm:$0xff]   ;;  %v223_v4 = vld [vmem:[%s3880_s10 + $0x20] sm:$0xff]   ;;  %v227_v5 = vld [vmem:[%s3880_s10 + $0x28] sm:$0xff]  }
  0x17   : > { %212 = vst [vmem:[%s3885_s11 + $0x8] sm:$0xff] %v211_v1   ;;  %v231_v6 = vld [vmem:[%s3880_s10 + $0x30] sm:$0xff]   ;;  %v235_v7 = vld [vmem:[%s3880_s10 + $0x38] sm:$0xff]   ;;  %v239_v8 = vld [vmem:[%s3880_s10 + $0x40] sm:$0xff]  }
  0x18   : > { %216 = vst [vmem:[%s3885_s11 + $0x10] sm:$0xff] %v215_v2   ;;  %v243_v9 = vld [vmem:[%s3880_s10 + $0x90] sm:$0xff]   ;;  %v247_v10 = vld [vmem:[%s3880_s10 + $0x98] sm:$0xff]   ;;  %v251_v11 = vld [vmem:[%s3880_s10 + $0xa0] sm:$0xff]  }
  0x19   : > { %220 = vst [vmem:[%s3885_s11 + $0x18] sm:$0xff] %v219_v3   ;;  %v255_v12 = vld [vmem:[%s3880_s10 + $0xa8] sm:$0xff]   ;;  %v259_v13 = vld [vmem:[%s3880_s10 + $0xb0] sm:$0xff]   ;;  %v263_v14 = vld [vmem:[%s3880_s10 + $0xb8] sm:$0xff]  }
  0x1a   : > { %224 = vst [vmem:[%s3885_s11 + $0x20] sm:$0xff] %v223_v4   ;;  %v267_v15 = vld [vmem:[%s3880_s10 + $0xc0] sm:$0xff]   ;;  %v271_v16 = vld [vmem:[%s3880_s10 + $0xc8] sm:$0xff]   ;;  %v275_v17 = vld [vmem:[%s3880_s10 + $0xd0] sm:$0xff]  }
  0x1b   : > { %228 = vst [vmem:[%s3885_s11 + $0x28] sm:$0xff] %v227_v5   ;;  %v279_v18 = vld [vmem:[%s3880_s10 + $0x120] sm:$0xff]   ;;  %v283_v19 = vld [vmem:[%s3880_s10 + $0x128] sm:$0xff]   ;;  %v287_v20 = vld [vmem:[%s3880_s10 + $0x130] sm:$0xff]  }
  0x1c   : > { %232 = vst [vmem:[%s3885_s11 + $0x30] sm:$0xff] %v231_v6   ;;  %v291_v21 = vld [vmem:[%s3880_s10 + $0x138] sm:$0xff]   ;;  %v295_v22 = vld [vmem:[%s3880_s10 + $0x140] sm:$0xff]   ;;  %v299_v23 = vld [vmem:[%s3880_s10 + $0x148] sm:$0xff]  }
  0x1d   : > { %236 = vst [vmem:[%s3885_s11 + $0x38] sm:$0xff] %v235_v7   ;;  %v303_v24 = vld [vmem:[%s3880_s10 + $0x150] sm:$0xff]   ;;  %v307_v25 = vld [vmem:[%s3880_s10 + $0x158] sm:$0xff]   ;;  %v311_v26 = vld [vmem:[%s3880_s10 + $0x160] sm:$0xff]  }
  0x1e   : > { %240 = vst [vmem:[%s3885_s11 + $0x40] sm:$0xff] %v239_v8   ;;  %v315_v27 = vld [vmem:[%s3880_s10 + $0x1b0] sm:$0xff]   ;;  %v319_v28 = vld [vmem:[%s3880_s10 + $0x1b8] sm:$0xff]   ;;  %v323_v29 = vld [vmem:[%s3880_s10 + $0x1c0] sm:$0xff]  }
  0x1f   : > { %244 = vst [vmem:[%s3885_s11 + $0x48] sm:$0xff] %v243_v9   ;;  %v327_v30 = vld [vmem:[%s3880_s10 + $0x1c8] sm:$0xff]   ;;  %v331_v31 = vld [vmem:[%s3880_s10 + $0x1d0] sm:$0xff]   ;;  %v335_v32 = vld [vmem:[%s3880_s10 + $0x1d8] sm:$0xff]  }
  0x20   : > { %248 = vst [vmem:[%s3885_s11 + $0x50] sm:$0xff] %v247_v10   ;;  %v339_v33 = vld [vmem:[%s3880_s10 + $0x1e0] sm:$0xff]   ;;  %v343_v34 = vld [vmem:[%s3880_s10 + $0x1e8] sm:$0xff]   ;;  %v347_v35 = vld [vmem:[%s3880_s10 + $0x1f0] sm:$0xff]  }
  0x21   : > { %252 = vst [vmem:[%s3885_s11 + $0x58] sm:$0xff] %v251_v11  }
  0x22   : > { %256 = vst [vmem:[%s3885_s11 + $0x60] sm:$0xff] %v255_v12  }
  0x23   : > { %260 = vst [vmem:[%s3885_s11 + $0x68] sm:$0xff] %v259_v13  }
  0x24   : > { %264 = vst [vmem:[%s3885_s11 + $0x70] sm:$0xff] %v263_v14  }
  0x25   : > { %268 = vst [vmem:[%s3885_s11 + $0x78] sm:$0xff] %v267_v15  }
  0x26   : > { %272 = vst [vmem:[%s3885_s11 + $0x80] sm:$0xff] %v271_v16  }
  0x27   : > { %276 = vst [vmem:[%s3885_s11 + $0x88] sm:$0xff] %v275_v17  }
  0x28   : > { %280 = vst [vmem:[%s3885_s11 + $0x90] sm:$0xff] %v279_v18  }
  0x29   : > { %284 = vst [vmem:[%s3885_s11 + $0x98] sm:$0xff] %v283_v19  }
  0x2a   : > { %288 = vst [vmem:[%s3885_s11 + $0xa0] sm:$0xff] %v287_v20  }
  0x2b   : > { %292 = vst [vmem:[%s3885_s11 + $0xa8] sm:$0xff] %v291_v21  }
  0x2c   : > { %296 = vst [vmem:[%s3885_s11 + $0xb0] sm:$0xff] %v295_v22  }
  0x2d   : > { %300 = vst [vmem:[%s3885_s11 + $0xb8] sm:$0xff] %v299_v23  }
  0x2e   : > { %304 = vst [vmem:[%s3885_s11 + $0xc0] sm:$0xff] %v303_v24  }
  0x2f   : > { %308 = vst [vmem:[%s3885_s11 + $0xc8] sm:$0xff] %v307_v25  }
  0x30   : > { %312 = vst [vmem:[%s3885_s11 + $0xd0] sm:$0xff] %v311_v26  }
  0x31   : > { %316 = vst [vmem:[%s3885_s11 + $0xd8] sm:$0xff] %v315_v27  }
  0x32   : > { %320 = vst [vmem:[%s3885_s11 + $0xe0] sm:$0xff] %v319_v28  }
  0x33   : > { %324 = vst [vmem:[%s3885_s11 + $0xe8] sm:$0xff] %v323_v29  }
  0x34   : > { %328 = vst [vmem:[%s3885_s11 + $0xf0] sm:$0xff] %v327_v30  }
  0x35   : > { %332 = vst [vmem:[%s3885_s11 + $0xf8] sm:$0xff] %v331_v31  }
  0x36   : > { %336 = vst [vmem:[%s3885_s11 + $0x100] sm:$0xff] %v335_v32  }
  0x37   : > { %340 = vst [vmem:[%s3885_s11 + $0x108] sm:$0xff] %v339_v33  }
  0x38   : > { %344 = vst [vmem:[%s3885_s11 + $0x110] sm:$0xff] %v343_v34  }
  0x39   : > { %348 = vst [vmem:[%s3885_s11 + $0x118] sm:$0xff] %v347_v35  }
  0x3a PF: > { %p2911_p10 = scmp.ge.s32.totalorder %s3791_s21, 1  ;;  %p517_p11 = scmp.lt.s32.totalorder %s3791_s21, 3 }
  0x3c   : > { %p518_p12 = pnand %p2911_p10, %p517_p11 }
  0x3e   : > { %521 = sbr.rel (%p518_p12) target bundleno = 684 (0x2ac), region = 77 }
  0x43   : > { %v2921_v36 = vld [vmem:[%s4866_s1 + $0x2] sm:$0x3]  ;;  %vm611_vm0 = vcmask 1041408   ;;  %s3962_s14 = sand.u32 1, %s3783_s19   ;;  %v566_v38 = vld [vmem:[%s4866_s1] sm:$0x3] }
  0x44   : > { %v613_v37 = vsel %vm611_vm0, %v2921_v36, 0  ;;  %s3680_s15 = smul.u32 288, %s3962_s14  ;;  %v2962_v39 = vld [vmem:[%s4866_s1 + $0x4] sm:$0x3]  ;;  %v677_v40 = vsel %vm611_vm0, %v566_v38, 0  ;;  %vm598_vm2 = vcmask 31744  }
  0x45   : > { %622 = vmatpush.bf16.msra.mxu0 %v613_v37  ;;  %v866_v41 = vsel %vm611_vm0, %v2962_v39, 0  ;;  %vm724_vm1 = vsmask.f32 3328  ;;  %vm725_vm3 = vsmask.f32 7440  ;;  %3675 = vmatpush.bf16.msra.mxu1 %v677_v40  ;;  %s2824_s6 = scalar_lea.sflag [#allocation5], %s3962_s14 }
  0x46   : > { %875 = vmatpush.bf16.msra.mxu2 %v866_v41  ;;  %s3974_s26 = scalar_lea.vmem [#allocation3], %s3680_s15  ;;  %3676 = vmatpush.bf16.msra.mxu3 %v866_v41  ;;  %v2975_v7 = vld [vmem:[%s4866_s1 + $0x6] sm:$0x3]  ;;  %vm3992_vm4 = vmor %vm724_vm1, %vm725_vm3  ;;  %s2912_s15 = sshll.u32 %s3962_s14, 6 }
  0x47   : > { %v2924_v42 = vld [vmem:[%s3974_s26 + $0x48] sm:$0xf]  ;;  %v3578_v43 = vld [vmem:[%s3974_s26 + $0x4c] sm:$0xf0]  ;;  %v708_v44 = vld [vmem:[%s3974_s26] sm:$0xf] }
  0x48   : > { %v2925_v45 = vor.u32 %v3578_v43, %v2924_v42  ;;  %v709_v46 = vld [vmem:[%s3974_s26 + $0x4] sm:$0x1]  ;;  %v710_v47 = vld [vmem:[%s3974_s26 + $0x8] sm:$0xf]  ;;  %v711_v48 = vld [vmem:[%s3974_s26 + $0xc] sm:$0x1] }
  0x49   : > { %686 = vmatpush.bf16.msrb.mxu0 %v677_v40  ;;  %v728_v49 = vshrl.u32 %v708_v44, 16  ;;  %v731_v50 = vshll.u32 %v708_v44, 16  ;;  %v737_v51 = vshll.u32 %v709_v46, 16  ;;  %v742_v52 = vshrl.u32 %v710_v47, 16  ;;  %v720_v53 = vld [vmem:[%s3974_s26 + $0x30] sm:$0xf] }
  0x4a   : > { %2938 = vmatmul.msk.bf16.vlgmr.msra.gmra.mxu0 %vm598_vm2, %v2925_v45  ;;  %v745_v54 = vshll.u32 %v710_v47, 16  ;;  %v751_v55 = vshll.u32 %v711_v48, 16  ;;  %v721_v56 = vld [vmem:[%s3974_s26 + $0x34] sm:$0x1]  ;;  %v722_v57 = vld [vmem:[%s3974_s26 + $0x38] sm:$0xf] }
  0x4b   : > { %v730_v58 = vrot.slane %v728_v49, 4  ;;  %v733_v59 = vrot.slane %v731_v50, 5  ;;  %v739_v60 = vrot.slane %v737_v51, 5  ;;  %v744_v61 = vrot.slane %v742_v52, 4  ;;  %v723_v62 = vld [vmem:[%s3974_s26 + $0x3c] sm:$0x1] }
  0x4c   : > { %v747_v63 = vrot.slane %v745_v54, 5  ;;  %v753_v0 = vrot.slane %v751_v55, 5  ;;  %v812_v1 = vshrl.u32 %v720_v53, 16  ;;  %v815_v2 = vshll.u32 %v720_v53, 16  ;;  %v2948_v13 = vld [vmem:[%s3974_s26 + $0x10] sm:$0xf] }
  0x4d   : > { %v734_v3 = vor.u32 %v733_v59, %v730_v58  ;;  %v821_v4 = vshll.u32 %v721_v56, 16  ;;  %v826_v5 = vshrl.u32 %v722_v57, 16  ;;  %v829_v6 = vshll.u32 %v722_v57, 16  ;;  %v3575_v18 = vld [vmem:[%s3974_s26 + $0x14] sm:$0xf0]  ;;  %s4768_s16 = scalar_lea.vmem [#allocation4], %s2912_s15 }
  0x4e   : > { %v748_v9 = vor.u32 %v747_v63, %v744_v61  ;;  %v814_v10 = vrot.slane %v812_v1, 4  ;;  %v817_v11 = vrot.slane %v815_v2, 5  ;;  %v835_v12 = vshll.u32 %v723_v62, 16  ;;  %v712_v22 = vld [vmem:[%s3974_s26 + $0x10] sm:$0xf]  ;;  %s3749_s11 = scalar_lea.hbm %s4870_s5, 128 }
  0x4f   : > { %v735_v14 = vrot.slane %v734_v3, 4  ;;  %v823_v15 = vrot.slane %v821_v4, 5  ;;  %v828_v16 = vrot.slane %v826_v5, 4  ;;  %v831_v17 = vrot.slane %v829_v6, 5  ;;  %v713_v23 = vld [vmem:[%s3974_s26 + $0x14] sm:$0x1] }
  0x50   : > { %v749_v19 = vrot.slane %v748_v9, 4  ;;  %v818_v20 = vor.u32 %v817_v11, %v814_v10  ;;  %v837_v21 = vrot.slane %v835_v12, 5  ;;  %v2949_v26 = vor.u32 %v3575_v18, %v2948_v13  ;;  %v714_v28 = vld [vmem:[%s3974_s26 + $0x18] sm:$0xf]  ;;  %v3579_v36 = vld [vmem:[%s3974_s26 + $0x5c] sm:$0xf0] }
  0x51   : > { %v740_v24 = vsel %vm3992_vm4, %v735_v14, %v739_v60  ;;  %v832_v25 = vor.u32 %v831_v17, %v828_v16  ;;  %v949_v27 = vsel %vm611_vm0, %v2975_v7, 0  ;;  %v2928_v32 = vld [vmem:[%s3974_s26 + $0x58] sm:$0xf]  ;;  %v756_v33 = vshrl.u32 %v712_v22, 16  ;;  %v715_v40 = vld [vmem:[%s3974_s26 + $0x1c] sm:$0x1] }
  0x52   : > { %v754_v29 = vsel %vm3992_vm4, %v749_v19, %v753_v0  ;;  %v841_v30 = vunpack.c.l.b16 %v740_v24  ;;  %v819_v31 = vrot.slane %v818_v20, 4  ;;  %958 = vmatpush.bf16.msrb.mxu3 %v949_v27  ;;  %2959 = vmatmul.msk.bf16.vlgmr.msra.gmra.mxu1 %vm598_vm2, %v2949_v26  ;;  %v759_v37 = vshll.u32 %v712_v22, 16  ;;  %v3083_v52 = vld [vmem:[%s4866_s1 + $0xe] sm:$0x3]  ;;  %v716_v59 = vld [vmem:[%s3974_s26 + $0x20] sm:$0xf] }
  0x53   : > { %v842_v34 = vunpack.c.l.b16 %v754_v29  ;;  %v833_v35 = vrot.slane %v832_v25, 4  ;;  %v765_v38 = vshll.u32 %v713_v23, 16  ;;  %v758_v41 = vrot.slane %v756_v33, 4  ;;  %v718_v62 = vld [vmem:[%s3974_s26 + $0x28] sm:$0xf] }
  0x54   : > { %v824_v39 = vsel %vm3992_vm4, %v819_v31, %v823_v15  ;;  %v770_v42 = vshrl.u32 %v714_v28, 16  ;;  %v773_v43 = vshll.u32 %v714_v28, 16  ;;  %v761_v47 = vrot.slane %v759_v37, 5  ;;  %v2952_v4 = vld [vmem:[%s3974_s26 + $0x20] sm:$0xf] }
  0x55   : > { %v849_v44 = vpack.c.b16 %v842_v34, %v841_v30  ;;  %v838_v45 = vsel %vm3992_vm4, %v833_v35, %v837_v21  ;;  %v847_v46 = vunpack.c.l.b16 %v824_v39  ;;  %v2929_v49 = vor.u32 %v3579_v36, %v2928_v32  ;;  %v3576_v5 = vld [vmem:[%s3974_s26 + $0x24] sm:$0xf0]  ;;  %v717_v16 = vld [vmem:[%s3974_s26 + $0x24] sm:$0x1]  ;;  %v719_v17 = vld [vmem:[%s3974_s26 + $0x2c] sm:$0x1] }
  0x56   : > { %v848_v48 = vunpack.c.l.b16 %v838_v45  ;;  %v772_v50 = vrot.slane %v770_v42, 4  ;;  %v775_v51 = vrot.slane %v773_v43, 5  ;;  %v762_v53 = vor.u32 %v761_v47, %v758_v41  ;;  %v2978_v18 = vld [vmem:[%s3974_s26 + $0x90] sm:$0xf]  ;;  %v3582_v20 = vld [vmem:[%s3974_s26 + $0x94] sm:$0xf0] }
  0x57   : > { %2963 = vmatmul.msk.bf16.vlgmr.msra.gmra.mxu2 %vm598_vm2, %v849_v44  ;;  %v779_v54 = vshll.u32 %v715_v40, 16  ;;  %v767_v56 = vrot.slane %v765_v38, 5  ;;  %v1392_v58 = vsel %vm611_vm0, %v3083_v52, 0  ;;  %v784_v0 = vshrl.u32 %v716_v59, 16  ;;  %v2932_v21 = vld [vmem:[%s3974_s26 + $0x68] sm:$0xf] }
  0x58   : > { %v852_v55 = vpack.c.b16 %v848_v48, %v847_v46  ;;  %v776_v57 = vor.u32 %v775_v51, %v772_v50  ;;  %v763_v60 = vrot.slane %v762_v53, 4  ;;  %v787_v1 = vshll.u32 %v716_v59, 16  ;;  %v3580_v22 = vld [vmem:[%s3974_s26 + $0x6c] sm:$0xf0]  ;;  %v3004_v33 = vld [vmem:[%s4866_s1 + $0x8] sm:$0x3] }
  0x59   : > { %v781_v61 = vrot.slane %v779_v54, 5  ;;  %v798_v6 = vshrl.u32 %v718_v62, 16  ;;  %v801_v7 = vshll.u32 %v718_v62, 16  ;;  %v2953_v11 = vor.u32 %v3576_v5, %v2952_v4  ;;  %v2956_v37 = vld [vmem:[%s3974_s26 + $0x30] sm:$0xf] }
  0x5a   : > { %2966 = vmatmul.msk.bf16.vlgmr.msra.gmra.mxu3 %vm598_vm2, %v852_v55  ;;  %2939 = vmatmul.msk.bf16.gmra.mxu0 %vm598_vm2, %v2929_v49  ;;  %v777_v63 = vrot.slane %v776_v57, 4  ;;  %v768_v2 = vsel %vm3992_vm4, %v763_v60, %v767_v56  ;;  %v786_v12 = vrot.slane %v784_v0, 4  ;;  %v789_v13 = vrot.slane %v787_v1, 5  ;;  %v3577_v38 = vld [vmem:[%s3974_s26 + $0x34] sm:$0xf0] }
  0x5b   : > { %1401 = vmatpush.bf16.msra.mxu3 %v1392_v58  ;;  %v843_v9 = vunpack.c.l.b16 %v768_v2  ;;  %v800_v14 = vrot.slane %v798_v6, 4  ;;  %v803_v15 = vrot.slane %v801_v7, 5  ;;  %v793_v24 = vshll.u32 %v717_v16, 16  ;;  %v2982_v42 = vld [vmem:[%s3974_s26 + $0xa0] sm:$0xf] }
  0x5c   : > { %v782_v3 = vsel %vm3992_vm4, %v777_v63, %v781_v61  ;;  %v790_v23 = vor.u32 %v789_v13, %v786_v12  ;;  %v807_v26 = vshll.u32 %v719_v17, 16  ;;  %v2979_v27 = vor.u32 %v3582_v20, %v2978_v18  ;;  %v3583_v43 = vld [vmem:[%s3974_s26 + $0xa4] sm:$0xf0]  ;;  %v2936_v44 = vld [vmem:[%s3974_s26 + $0x78] sm:$0xf] }
  0x5d   : > { %v844_v10 = vunpack.c.l.b16 %v782_v3  ;;  %v804_v25 = vor.u32 %v803_v15, %v800_v14  ;;  %v2933_v28 = vor.u32 %v3580_v22, %v2932_v21  ;;  %v795_v30 = vrot.slane %v793_v24, 5  ;;  %v3581_v45 = vld [vmem:[%s3974_s26 + $0x7c] sm:$0xf0]  ;;  %v3025_v47 = vld [vmem:[%s3974_s26 + $0x90] sm:$0xf] }
  0x5e   : > { %v791_v29 = vrot.slane %v790_v23, 4  ;;  %v809_v32 = vrot.slane %v807_v26, 5  ;;  %v1032_v34 = vsel %vm611_vm0, %v3004_v33, 0  ;;  %v2957_v41 = vor.u32 %v3577_v38, %v2956_v37  ;;  %v3027_v48 = vld [vmem:[%s3974_s26 + $0x98] sm:$0xf] }
  0x5f   : > { %v850_v19 = vpack.c.b16 %v844_v10, %v843_v9  ;;  %v805_v31 = vrot.slane %v804_v25, 4  ;;  %1041 = vmatpush.bf16.msra.mxu0 %v1032_v34  ;;  %v1088_v49 = vshrl.u32 %v3025_v47, 16  ;;  %v1091_v50 = vshll.u32 %v3025_v47, 16  ;;  %v3026_v59 = vld [vmem:[%s3974_s26 + $0x94] sm:$0x1] }
  0x60   : > { %v796_v35 = vsel %vm3992_vm4, %v791_v29, %v795_v30  ;;  %v1102_v51 = vshrl.u32 %v3027_v48, 16  ;;  %v1105_v52 = vshll.u32 %v3027_v48, 16  ;;  %v2983_v53 = vor.u32 %v3583_v43, %v2982_v42  ;;  %v3028_v60 = vld [vmem:[%s3974_s26 + $0x9c] sm:$0x1]  ;;  %v3054_v61 = vld [vmem:[%s4866_s1 + $0xc] sm:$0x3] }
  0x61   : > { %v810_v36 = vsel %vm3992_vm4, %v805_v31, %v809_v32  ;;  %v845_v39 = vunpack.c.l.b16 %v796_v35  ;;  %v2937_v54 = vor.u32 %v3581_v45, %v2936_v44  ;;  %v1090_v55 = vrot.slane %v1088_v49, 4  ;;  %v3041_v3 = vld [vmem:[%s4866_s1 + $0xa] sm:$0x3]  ;;  %v3120_v6 = vld [vmem:[%s4866_s1 + $0x10] sm:$0x3] }
  0x62   : > { %2960 = vmatmul.msk.bf16.gmra.mxu1 %vm598_vm2, %v2953_v11  ;;  %v846_v40 = vunpack.c.l.b16 %v810_v36  ;;  %v1093_v56 = vrot.slane %v1091_v50, 5  ;;  %v1104_v57 = vrot.slane %v1102_v51, 4  ;;  %v1107_v58 = vrot.slane %v1105_v52, 5  ;;  %v3057_v16 = vld [vmem:[%s3974_s26 + $0x8] sm:$0xf] }
  0x63   : > { %v1097_v63 = vshll.u32 %v3026_v59, 16  ;;  %v1111_v1 = vshll.u32 %v3028_v60, 16  ;;  %v1309_v2 = vsel %vm611_vm0, %v3054_v61, 0  ;;  %v1226_v4 = vsel %vm611_vm0, %v3041_v3, 0  ;;  %v3590_v17 = vld [vmem:[%s3974_s26 + $0xc] sm:$0xf0] }
  0x64   : > { %v851_v46 = vpack.c.b16 %v846_v40, %v845_v39  ;;  %v1094_v62 = vor.u32 %v1093_v56, %v1090_v55  ;;  %v1108_v0 = vor.u32 %v1107_v58, %v1104_v57  ;;  %1318 = vmatpush.bf16.msrb.mxu2 %v1309_v2  ;;  %1235 = vmatpush.bf16.msrb.mxu1 %v1226_v4  ;;  %v1586_v11 = vsel %vm611_vm0, %v3120_v6, 0  ;;  %v2986_v18 = vld [vmem:[%s3974_s26 + $0xb0] sm:$0xf]  ;;  %v3584_v20 = vld [vmem:[%s3974_s26 + $0xb4] sm:$0xf0] }
  0x65   : > { %v1099_v7 = vrot.slane %v1097_v63, 5  ;;  %v1113_v10 = vrot.slane %v1111_v1, 5  ;;  %v2944_v21 = vld [vmem:[%s3974_s26] sm:$0xf]  ;;  %v3574_v22 = vld [vmem:[%s3974_s26 + $0x4] sm:$0xf0]  ;;  %v3058_v23 = vor.u32 %v3590_v17, %v3057_v16  ;;  %v2987_v30 = vor.u32 %v3584_v20, %v2986_v18 }
  0x66   : > { %v1095_v5 = vrot.slane %v1094_v62, 4  ;;  %v1109_v9 = vrot.slane %v1108_v0, 4  ;;  %v3029_v24 = vld [vmem:[%s3974_s26 + $0xa0] sm:$0xf]  ;;  %v3031_v25 = vld [vmem:[%s3974_s26 + $0xa8] sm:$0xf]  ;;  %v2945_v31 = vor.u32 %v3574_v22, %v2944_v21 }
  0x67   : > { %2964 = vmatmul.msk.bf16.gmra.mxu2 %vm598_vm2, %v850_v19  ;;  %v1116_v26 = vshrl.u32 %v3029_v24, 16  ;;  %v1133_v29 = vshll.u32 %v3031_v25, 16  ;;  %v3030_v36 = vld [vmem:[%s3974_s26 + $0xa4] sm:$0x1]  ;;  %v3032_v37 = vld [vmem:[%s3974_s26 + $0xac] sm:$0x1] }
  0x68   : > { %v1100_v12 = vsel %vm3992_vm4, %v1095_v5, %v1099_v7  ;;  %v1114_v13 = vsel %vm3992_vm4, %v1109_v9, %v1113_v10  ;;  %v1125_v39 = vshll.u32 %v3030_v36, 16  ;;  %v3061_v50 = vld [vmem:[%s3974_s26 + $0x18] sm:$0xf]  ;;  %v3591_v51 = vld [vmem:[%s3974_s26 + $0x1c] sm:$0xf0] }
  0x69   : > { %v1201_v14 = vunpack.c.l.b16 %v1100_v12  ;;  %v1202_v15 = vunpack.c.l.b16 %v1114_v13  ;;  %v1118_v32 = vrot.slane %v1116_v26, 4  ;;  %v1135_v35 = vrot.slane %v1133_v29, 5  ;;  %v2990_v52 = vld [vmem:[%s3974_s26 + $0xc0] sm:$0xf]  ;;  %v3007_v55 = vld [vmem:[%s3974_s26 + $0xd8] sm:$0xf] }
  0x6a   : > { %2992 = vmatmul.msk.bf16.vlgmr.msrb.gmra.mxu3 %vm598_vm2, %v2979_v27  ;;  %2940 = vmatmul.msk.bf16.gmra.mxu0 %vm598_vm2, %v2933_v28  ;;  %v1119_v27 = vshll.u32 %v3029_v24, 16  ;;  %v1130_v28 = vshrl.u32 %v3031_v25, 16  ;;  %v1127_v43 = vrot.slane %v1125_v39, 5  ;;  %v3586_v56 = vld [vmem:[%s3974_s26 + $0xdc] sm:$0xf0]  ;;  %v3062_v57 = vor.u32 %v3591_v51, %v3061_v50 }
  0x6b   : > { %3677 = vmatpush.bf16.msrb.mxu3 %v1586_v11  ;;  %v1209_v19 = vpack.c.b16 %v1202_v15, %v1201_v14  ;;  %v3033_v58 = vld [vmem:[%s3974_s26 + $0xb0] sm:$0xf]  ;;  %v3035_v59 = vld [vmem:[%s3974_s26 + $0xb8] sm:$0xf]  ;;  %v3008_v1 = vor.u32 %v3586_v56, %v3007_v55  ;;  %v3034_v6 = vld [vmem:[%s3974_s26 + $0xb4] sm:$0x1] }
  0x6c   : > { %v1121_v33 = vrot.slane %v1119_v27, 5  ;;  %v1132_v34 = vrot.slane %v1130_v28, 4  ;;  %v1144_v60 = vshrl.u32 %v3033_v58, 16  ;;  %v1147_v61 = vshll.u32 %v3033_v58, 16  ;;  %v3036_v7 = vld [vmem:[%s3974_s26 + $0xbc] sm:$0x1] }
  0x6d   : > { %v1158_v62 = vshrl.u32 %v3035_v59, 16  ;;  %v1161_v63 = vshll.u32 %v3035_v59, 16  ;;  %v1153_v10 = vshll.u32 %v3034_v6, 16  ;;  %v1167_v12 = vshll.u32 %v3036_v7, 16  ;;  %v3065_v21 = vld [vmem:[%s3974_s26 + $0x28] sm:$0xf] }
  0x6e   : > { %v1122_v38 = vor.u32 %v1121_v33, %v1118_v32  ;;  %v1136_v40 = vor.u32 %v1135_v35, %v1132_v34  ;;  %v1146_v2 = vrot.slane %v1144_v60, 4  ;;  %v1149_v3 = vrot.slane %v1147_v61, 5  ;;  %v3592_v22 = vld [vmem:[%s3974_s26 + $0x2c] sm:$0xf0]  ;;  %v3594_v25 = vld [vmem:[%s3974_s26 + $0x54] sm:$0xf0] }
  0x6f   : > { %v1160_v4 = vrot.slane %v1158_v62, 4  ;;  %v1163_v5 = vrot.slane %v1161_v63, 5  ;;  %v1155_v14 = vrot.slane %v1153_v10, 5  ;;  %v1169_v16 = vrot.slane %v1167_v12, 5  ;;  %v3011_v26 = vld [vmem:[%s3974_s26 + $0xe8] sm:$0xf] }
  0x70   : > { %v1123_v42 = vrot.slane %v1122_v38, 4  ;;  %v1137_v44 = vrot.slane %v1136_v40, 4  ;;  %v1150_v9 = vor.u32 %v1149_v3, %v1146_v2  ;;  %v3587_v27 = vld [vmem:[%s3974_s26 + $0xec] sm:$0xf0]  ;;  %v3066_v28 = vor.u32 %v3592_v22, %v3065_v21  ;;  %v3037_v29 = vld [vmem:[%s3974_s26 + $0xc0] sm:$0xf] }
  0x71   : > { %v1175_v32 = vshll.u32 %v3037_v29, 16  ;;  %v3012_v36 = vor.u32 %v3587_v27, %v3011_v26  ;;  %v3069_v55 = vld [vmem:[%s3974_s26 + $0x38] sm:$0xf]  ;;  %v3593_v56 = vld [vmem:[%s3974_s26 + $0x3c] sm:$0xf0] }
  0x72   : > { %2961 = vmatmul.msk.bf16.gmra.mxu1 %vm598_vm2, %v2957_v41  ;;  %v1139_v41 = vshll.u32 %v3032_v37, 16  ;;  %v1151_v13 = vrot.slane %v1150_v9, 4  ;;  %v3090_v58 = vld [vmem:[%s3974_s26 + $0x60] sm:$0xf]  ;;  %v3595_v59 = vld [vmem:[%s3974_s26 + $0x64] sm:$0xf0]  ;;  %v3070_v62 = vor.u32 %v3593_v56, %v3069_v55 }
  0x73   : > { %v1177_v38 = vrot.slane %v1175_v32, 5  ;;  %v3015_v60 = vld [vmem:[%s3974_s26 + $0xf8] sm:$0xf]  ;;  %v3588_v61 = vld [vmem:[%s3974_s26 + $0xfc] sm:$0xf0]  ;;  %v3091_v63 = vor.u32 %v3595_v59, %v3090_v58 }
  0x74   : > { %v1141_v45 = vrot.slane %v1139_v41, 5  ;;  %v1156_v17 = vsel %vm3992_vm4, %v1151_v13, %v1155_v14  ;;  %v3038_v41 = vld [vmem:[%s3974_s26 + $0xc4] sm:$0x1]  ;;  %v3106_v2 = vld [vmem:[%s3974_s26 + $0x10] sm:$0xf] }
  0x75   : > { %v1465_v6 = vshll.u32 %v3106_v2, 16  ;;  %v3105_v12 = vld [vmem:[%s3974_s26 + $0xc] sm:$0x1]  ;;  %v3107_v13 = vld [vmem:[%s3974_s26 + $0x14] sm:$0x1] }
  0x76   : > { %v1142_v47 = vsel %vm3992_vm4, %v1137_v44, %v1141_v45  ;;  %v1181_v44 = vshll.u32 %v3038_v41, 16  ;;  %v3094_v14 = vld [vmem:[%s3974_s26 + $0x70] sm:$0xf]  ;;  %v1471_v21 = vshll.u32 %v3107_v13, 16  ;;  %v3110_v32 = vld [vmem:[%s3974_s26 + $0x20] sm:$0xf] }
  0x77   : > { %2965 = vmatmul.msk.bf16.gmra.mxu2 %vm598_vm2, %v851_v46  ;;  %v1128_v46 = vsel %vm3992_vm4, %v1123_v42, %v1127_v43  ;;  %v1204_v49 = vunpack.c.l.b16 %v1142_v47  ;;  %v3040_v42 = vld [vmem:[%s3974_s26 + $0xcc] sm:$0x1]  ;;  %v1490_v41 = vshrl.u32 %v3110_v32, 16  ;;  %v3109_v59 = vld [vmem:[%s3974_s26 + $0x1c] sm:$0x1] }
  0x78   : > { %v1203_v48 = vunpack.c.l.b16 %v1128_v46  ;;  %v1195_v46 = vshll.u32 %v3040_v42, 16  ;;  %v1493_v42 = vshll.u32 %v3110_v32, 16 }
  0x7a   : > { %2993 = vmatmul.msk.bf16.gmra.mxu3 %vm598_vm2, %v2983_v53  ;;  %2941 = vmatmul.msk.bf16.gmra.mxu0 %vm598_vm2, %v2937_v54  ;;  %v1210_v53 = vpack.c.b16 %v1204_v49, %v1203_v48  ;;  %v3585_v54 = vld [vmem:[%s3974_s26 + $0xc4] sm:$0xf0]  ;;  %v1183_v48 = vrot.slane %v1181_v44, 5  ;;  %v1197_v50 = vrot.slane %v1195_v46, 5  ;;  %v3098_v44 = vld [vmem:[%s3974_s26 + $0x80] sm:$0xf] }
  0x7b   : > { %v2991_v0 = vor.u32 %v3585_v54, %v2990_v52  ;;  %v1495_v58 = vrot.slane %v1493_v42, 5  ;;  %v3117_v42 = vld [vmem:[%s3974_s26 + $0x3c] sm:$0x1] }
  0x82   : > { %3042 = vmatmul.msk.bf16.vlgmr.msrb.gmra.mxu1 %vm598_vm2, %v1209_v19  ;;  %v1205_v19 = vunpack.c.l.b16 %v1156_v17  ;;  %v3589_v17 = vld [vmem:[%s3974_s26 + $0x10c] sm:$0xf0] }
  0x87   : > { %3071 = vmatmul.msk.bf16.vlgmr.msrb.gmra.mxu2 %vm598_vm2, %v3058_v23  ;;  %v3086_v23 = vld [vmem:[%s3974_s26 + $0x50] sm:$0xf] }
  0x88   : > { %v3087_v35 = vor.u32 %v3594_v25, %v3086_v23 }
  0x8a   : > { %2994 = vmatmul.msk.bf16.gmra.mxu3 %vm598_vm2, %v2987_v30  ;;  %2958 = vmatmul.msk.bf16.vlgmr.msrb.gmra.mxu0 %vm598_vm2, %v2945_v31  ;;  %v3039_v30 = vld [vmem:[%s3974_s26 + $0xc8] sm:$0xf]  ;;  %v1172_v31 = vshrl.u32 %v3037_v29, 16 }
  0x8b   : > { %1595 = vmatpush.bf16.msrb.mxu0 %v1586_v11  ;;  %v1164_v11 = vor.u32 %v1163_v5, %v1160_v4  ;;  %v1186_v33 = vshrl.u32 %v3039_v30, 16  ;;  %v1189_v34 = vshll.u32 %v3039_v30, 16  ;;  %v1462_v5 = vshrl.u32 %v3106_v2, 16  ;;  %v3112_v29 = vld [vmem:[%s3974_s26 + $0x28] sm:$0xf] }
  0x8c   : > { %v1174_v37 = vrot.slane %v1172_v31, 4  ;;  %v3114_v30 = vld [vmem:[%s3974_s26 + $0x30] sm:$0xf]  ;;  %v3108_v31 = vld [vmem:[%s3974_s26 + $0x18] sm:$0xf] }
  0x8d   : > { %v1165_v15 = vrot.slane %v1164_v11, 4  ;;  %v1188_v39 = vrot.slane %v1186_v33, 4  ;;  %v1191_v40 = vrot.slane %v1189_v34, 5  ;;  %v1464_v10 = vrot.slane %v1462_v5, 4 }
  0x8e   : > { %v1178_v43 = vor.u32 %v1177_v38, %v1174_v37  ;;  %v1467_v11 = vrot.slane %v1465_v6, 5  ;;  %v1518_v37 = vshrl.u32 %v3114_v30, 16  ;;  %v1521_v38 = vshll.u32 %v3114_v30, 16 }
  0x8f   : > { %v1170_v18 = vsel %vm3992_vm4, %v1165_v15, %v1169_v16  ;;  %v1192_v45 = vor.u32 %v1191_v40, %v1188_v39  ;;  %v3596_v15 = vld [vmem:[%s3974_s26 + $0x74] sm:$0xf0]  ;;  %v3019_v16 = vld [vmem:[%s3974_s26 + $0x108] sm:$0xf]  ;;  %v1476_v39 = vshrl.u32 %v3108_v31, 16  ;;  %v1479_v40 = vshll.u32 %v3108_v31, 16 }
  0x90   : > { %v1206_v20 = vunpack.c.l.b16 %v1170_v18  ;;  %v1179_v47 = vrot.slane %v1178_v43, 4  ;;  %v3095_v22 = vor.u32 %v3596_v15, %v3094_v14  ;;  %v3020_v23 = vor.u32 %v3589_v17, %v3019_v16 }
  0x91   : > { %v1193_v49 = vrot.slane %v1192_v45, 4  ;;  %v3597_v45 = vld [vmem:[%s3974_s26 + $0x84] sm:$0xf0]  ;;  %v1478_v55 = vrot.slane %v1476_v39, 4  ;;  %v1481_v56 = vrot.slane %v1479_v40, 5 }
  0x92   : > { %3043 = vmatmul.msk.bf16.gmra.mxu1 %vm598_vm2, %v1210_v53  ;;  %v1211_v24 = vpack.c.b16 %v1206_v20, %v1205_v19  ;;  %v1184_v51 = vsel %vm3992_vm4, %v1179_v47, %v1183_v48  ;;  %v1457_v19 = vshll.u32 %v3105_v12, 16  ;;  %v1468_v20 = vor.u32 %v1467_v11, %v1464_v10 }
  0x93   : > { %v1198_v52 = vsel %vm3992_vm4, %v1193_v49, %v1197_v50  ;;  %v1207_v53 = vunpack.c.l.b16 %v1184_v51  ;;  %v3113_v49 = vld [vmem:[%s3974_s26 + $0x2c] sm:$0x1] }
  0x94   : > { %v1208_v54 = vunpack.c.l.b16 %v1198_v52  ;;  %v1459_v26 = vrot.slane %v1457_v19, 5  ;;  %v1469_v27 = vrot.slane %v1468_v20, 4  ;;  %v1520_v52 = vrot.slane %v1518_v37, 4  ;;  %v3116_v19 = vld [vmem:[%s3974_s26 + $0x38] sm:$0xf] }
  0x95   : > { %v3118_v20 = vld [vmem:[%s3974_s26 + $0x40] sm:$0xf] }
  0x96   : > { %v1546_v30 = vshrl.u32 %v3118_v20, 16  ;;  %v1549_v31 = vshll.u32 %v3118_v20, 16 }
  0x97   : > { %3072 = vmatmul.msk.bf16.gmra.mxu2 %vm598_vm2, %v3062_v57  ;;  %v1212_v57 = vpack.c.b16 %v1208_v54, %v1207_v53  ;;  %v1523_v53 = vrot.slane %v1521_v38, 5  ;;  %v3115_v54 = vld [vmem:[%s3974_s26 + $0x34] sm:$0x1] }
  0x98   : > { %v1527_v2 = vshll.u32 %v3115_v54, 16  ;;  %v1548_v40 = vrot.slane %v1546_v30, 4  ;;  %v3598_v30 = vld [vmem:[%s3974_s26 + $0xdc] sm:$0xf0] }
  0x9a   : > { %2995 = vmatmul.msk.bf16.gmra.mxu3 %vm598_vm2, %v2991_v0  ;;  %3021 = vmatmul.msk.bf16.vlgmr.msra.gmra.mxu0 %vm598_vm2, %v3008_v1  ;;  %v3016_v0 = vor.u32 %v3588_v61, %v3015_v60  ;;  %v3104_v1 = vld [vmem:[%s3974_s26 + $0x8] sm:$0xf]  ;;  %v3111_v60 = vld [vmem:[%s3974_s26 + $0x24] sm:$0x1]  ;;  %v3099_v61 = vor.u32 %v3597_v45, %v3098_v44  ;;  %v1529_v14 = vrot.slane %v1527_v2, 5 }
  0x9b   : > { %v1448_v3 = vshrl.u32 %v3104_v1, 16  ;;  %v1451_v4 = vshll.u32 %v3104_v1, 16  ;;  %v1524_v1 = vor.u32 %v1523_v53, %v1520_v52  ;;  %v1499_v6 = vshll.u32 %v3111_v60, 16  ;;  %v3119_v44 = vld [vmem:[%s3974_s26 + $0x44] sm:$0x1] }
  0x9c   : > { %v1555_v52 = vshll.u32 %v3119_v44, 16  ;;  %v3614_v44 = vld [vmem:[%s4867_s2 + $0x60] sm:$0xff] }
  0x9d   : > { %v1450_v7 = vrot.slane %v1448_v3, 4  ;;  %v1453_v9 = vrot.slane %v1451_v4, 5  ;;  %v1482_v3 = vor.u32 %v1481_v56, %v1478_v55  ;;  %v1485_v4 = vshll.u32 %v3109_v59, 16 }
  0x9e   : > { %v1525_v13 = vrot.slane %v1524_v1, 4 }
  0x9f   : > { %v1454_v18 = vor.u32 %v1453_v9, %v1450_v7  ;;  %v1483_v15 = vrot.slane %v1482_v3, 4  ;;  %v1487_v16 = vrot.slane %v1485_v4, 5 }
  0xa1   : > { %v1455_v25 = vrot.slane %v1454_v18, 4  ;;  %v1501_v18 = vrot.slane %v1499_v6, 5 }
  0xa2   : > { %3044 = vmatmul.msk.bf16.gmra.mxu1 %vm598_vm2, %v1211_v24 }
  0xa3   : > { %v1460_v33 = vsel %vm3992_vm4, %v1455_v25, %v1459_v26  ;;  %v1488_v25 = vsel %vm3992_vm4, %v1483_v15, %v1487_v16 }
  0xa4   : > { %v1561_v47 = vunpack.c.l.b16 %v1460_v33 }
  0xa7   : > { %3073 = vmatmul.msk.bf16.gmra.mxu2 %vm598_vm2, %v3066_v28  ;;  %v1473_v28 = vrot.slane %v1471_v21, 5 }
  0xa9   : > { %v1474_v34 = vsel %vm3992_vm4, %v1469_v27, %v1473_v28  ;;  %v1532_v28 = vshrl.u32 %v3116_v19, 16 }
  0xaa   : > { %3100 = vmatmul.msk.bf16.vlgmr.msra.gmra.mxu3 %vm598_vm2, %v3087_v35  ;;  %3022 = vmatmul.msk.bf16.gmra.mxu0 %vm598_vm2, %v3012_v36  ;;  %v1504_v35 = vshrl.u32 %v3112_v29, 16  ;;  %v1507_v36 = vshll.u32 %v3112_v29, 16  ;;  %v1562_v48 = vunpack.c.l.b16 %v1474_v34  ;;  %v1535_v29 = vshll.u32 %v3116_v19, 16 }
  0xab   : > { %v1534_v38 = vrot.slane %v1532_v28, 4 }
  0xac   : > { %v1506_v50 = vrot.slane %v1504_v35, 4  ;;  %v1509_v51 = vrot.slane %v1507_v36, 5  ;;  %v1563_v36 = vunpack.c.l.b16 %v1488_v25  ;;  %v1537_v39 = vrot.slane %v1535_v29, 5  ;;  %v3617_v25 = vld [vmem:[%s4867_s2 + $0x78] sm:$0xff] }
  0xad   : > { %1876 = vmatpush.bf16.msra.mxu2 %v3617_v25  ;;  %v3135_v29 = vld [vmem:[%s3974_s26 + $0xd8] sm:$0xf]  ;;  %v3631_v25 = vld [vmem:[%s4867_s2 + $0xe8] sm:$0xff] }
  0xb2   : > { %3045 = vmatmul.msk.bf16.gmra.mxu1 %vm598_vm2, %v1212_v57  ;;  %v1492_v57 = vrot.slane %v1490_v41, 4  ;;  %v1551_v41 = vrot.slane %v1549_v31, 5 }
  0xb4   : > { %v1496_v5 = vor.u32 %v1495_v58, %v1492_v57  ;;  %v1557_v58 = vrot.slane %v1555_v52, 5 }
  0xb6   : > { %v1497_v17 = vrot.slane %v1496_v5, 4 }
  0xb7   : > { %3074 = vmatmul.msk.bf16.gmra.mxu2 %vm598_vm2, %v3070_v62  ;;  %v1569_v62 = vpack.c.b16 %v1562_v48, %v1561_v47 }
  0xb8   : > { %v1502_v26 = vsel %vm3992_vm4, %v1497_v17, %v1501_v18 }
  0xb9   : > { %v1564_v37 = vunpack.c.l.b16 %v1502_v26  ;;  %v1688_v26 = vld [vmem:[%s4868_s3] sm:$0x3] }
  0xba   : > { %3101 = vmatmul.msk.bf16.gmra.mxu3 %vm598_vm2, %v3091_v63  ;;  %3023 = vmatmul.msk.bf16.gmra.mxu0 %vm598_vm2, %v3016_v0  ;;  %v1510_v63 = vor.u32 %v1509_v51, %v1506_v50  ;;  %v1513_v0 = vshll.u32 %v3113_v49, 16  ;;  %v1538_v49 = vor.u32 %v1537_v39, %v1534_v38  ;;  %v1541_v50 = vshll.u32 %v3117_v42, 16  ;;  %v3139_v39 = vld [vmem:[%s3974_s26 + $0xe8] sm:$0xf] }
  0xbb   : > { %v1570_v47 = vpack.c.b16 %v1564_v37, %v1563_v36  ;;  %v1552_v51 = vor.u32 %v1551_v41, %v1548_v40  ;;  %v3615_v37 = vld [vmem:[%s4867_s2 + $0x68] sm:$0xff]  ;;  %v3599_v40 = vld [vmem:[%s3974_s26 + $0xec] sm:$0xf0] }
  0xbc   : > { %v1511_v11 = vrot.slane %v1510_v63, 4  ;;  %v1515_v12 = vrot.slane %v1513_v0, 5  ;;  %v1539_v55 = vrot.slane %v1538_v49, 4  ;;  %v1543_v56 = vrot.slane %v1541_v50, 5  ;;  %v3613_v49 = vld [vmem:[%s4867_s2 + $0x58] sm:$0xff] }
  0xbd   : > { %v1553_v57 = vrot.slane %v1552_v51, 4  ;;  %v3140_v42 = vor.u32 %v3599_v40, %v3139_v39  ;;  %v3609_v50 = vld [vmem:[%s4867_s2 + $0x38] sm:$0xff]  ;;  %v3603_v40 = vld [vmem:[%s4867_s2 + $0x8] sm:$0xff] }
  0xbe   : > { %v3625_v51 = vld [vmem:[%s4867_s2 + $0xb8] sm:$0xff]  ;;  %1953 = vmatpush.bf16.msra.mxu3 %v3609_v50 }
  0xbf   : > { %2059 = vmatpush.bf16.msra.mxu0 %v3625_v51 }
  0xc7   : > { %v4149_v24 = vpop.f32.mrf.mxu0 }
  0xca   : > { %3102 = vmatmul.msk.bf16.gmra.mxu3 %vm598_vm2, %v3095_v22  ;;  %3024 = vmatmul.msk.bf16.gmra.mxu0 %vm598_vm2, %v3020_v23  ;;  %v1516_v22 = vsel %vm3992_vm4, %v1511_v11, %v1515_v12  ;;  %v1530_v23 = vsel %vm3992_vm4, %v1525_v13, %v1529_v14 }
  0xcb   : > { %v1565_v34 = vunpack.c.l.b16 %v1516_v22  ;;  %v1566_v35 = vunpack.c.l.b16 %v1530_v23 }
  0xcf   : > { %v4161_v43 = vpop.f32.mrf.mxu0  ;;  %v693_v46 = vpop.f32.mrf.mxu1 }
  0xd7   : > { %v629_v7 = vpop.f32.mrf.mxu0  ;;  %v4171_v10 = vpop.f32.mrf.mxu1 }
  0xd8   : > { %v4169_v9 = vadd.f32 %v693_v46, %v629_v7  ;;  %v1571_v46 = vpack.c.b16 %v1566_v35, %v1565_v34 }
  0xda   : > { %3103 = vmatmul.msk.bf16.gmra.mxu3 %vm598_vm2, %v3099_v61  ;;  %3121 = vmatmul.msk.bf16.vlgmr.msrb.gmra.mxu0 %vm598_vm2, %v1569_v62  ;;  %v877_v32 = vpop.f32.mrf.mxu2  ;;  %v1544_v61 = vsel %vm3992_vm4, %v1539_v55, %v1543_v56  ;;  %v1558_v62 = vsel %vm3992_vm4, %v1553_v57, %v1557_v58  ;;  %v3608_v55 = vld [vmem:[%s4867_s2 + $0x30] sm:$0xff]  ;;  %v3143_v58 = vld [vmem:[%s3974_s26 + $0xf8] sm:$0xf] }
  0xdb   : > { %v1567_v63 = vunpack.c.l.b16 %v1544_v61  ;;  %v1568_v0 = vunpack.c.l.b16 %v1558_v62  ;;  %v3624_v57 = vld [vmem:[%s4867_s2 + $0xb0] sm:$0xff]  ;;  %1954 = vmatpush.bf16.msra.mxu3 %v3608_v55  ;;  %v3602_v55 = vld [vmem:[%s4867_s2] sm:$0xff] }
  0xdc   : > { %2060 = vmatpush.bf16.msra.mxu0 %v3624_v57  ;;  %v3618_v57 = vld [vmem:[%s4867_s2 + $0x80] sm:$0xff] }
  0xdd   : > { %v892_v21 = vpop.f32.mrf.mxu3  ;;  %v1572_v4 = vpack.c.b16 %v1568_v0, %v1567_v63  ;;  %v3612_v0 = vld [vmem:[%s4867_s2 + $0x50] sm:$0xff] }
  0xdf   : > { %v4185_v27 = vpop.f32.mrf.mxu0  ;;  %v698_v33 = vpop.f32.mrf.mxu1 }
  0xe2   : > { %v4191_v53 = vpop.f32.mrf.mxu2 }
  0xe5   : > { %v4189_v45 = vpop.f32.mrf.mxu3 }
  0xe7   : > { %v634_v48 = vpop.f32.mrf.mxu0  ;;  %v4195_v54 = vpop.f32.mrf.mxu1 }
  0xe8   : > { %v699_v19 = vadd.f32 %v698_v33, %v634_v48  ;;  %v3616_v33 = vld [vmem:[%s4867_s2 + $0x70] sm:$0xff] }
  0xe9   : > { %1877 = vmatpush.bf16.msra.mxu2 %v3616_v33  ;;  %v3147_v33 = vld [vmem:[%s3974_s26 + $0x108] sm:$0xf] }
  0xea   : > { %3123 = vmatmul.msk.bf16.vlgmr.msrb.gmra.mxu3 %vm598_vm2, %v1571_v46  ;;  %3122 = vmatmul.msk.bf16.gmra.mxu0 %vm598_vm2, %v1570_v47  ;;  %v882_v1 = vpop.f32.mrf.mxu2 }
  0xeb   : > { %v899_v11 = vadd.f32 %v882_v1, %v4169_v9  ;;  %v3607_v1 = vld [vmem:[%s4867_s2 + $0x28] sm:$0xff] }
  0xec   : > { %1955 = vmatpush.bf16.msra.mxu3 %v3607_v1 }
  0xed   : > { %v960_v59 = vpop.f32.mrf.mxu3  ;;  %1878 = vmatpush.bf16.msra.mxu2 %v3615_v37 }
  0xef   : > { %v4197_v60 = vpop.f32.mrf.mxu0  ;;  %v703_v3 = vpop.f32.mrf.mxu1 }
  0xf1   : > { %1879 = vmatpush.bf16.msra.mxu2 %v3614_v44  ;;  %v3629_v44 = vld [vmem:[%s4867_s2 + $0xd8] sm:$0xff] }
  0xf2   : > { %v4209_v14 = vpop.f32.mrf.mxu2 }
  0xf5   : > { %v4203_v2 = vpop.f32.mrf.mxu3  ;;  %1880 = vmatpush.bf16.msra.mxu2 %v3613_v49 }
  0xf7   : > { %v639_v5 = vpop.f32.mrf.mxu0  ;;  %v4256_v47 = vpop.f32.mrf.mxu1 }
  0xf8   : > { %v704_v6 = vadd.f32 %v703_v3, %v639_v5  ;;  %v3623_v3 = vld [vmem:[%s4867_s2 + $0xa8] sm:$0xff]  ;;  %v3633_v5 = vld [vmem:[%s4867_s2 + $0xf8] sm:$0xff] }
  0xf9   : > { %1881 = vmatpush.bf16.msra.mxu2 %v3612_v0  ;;  %2061 = vmatpush.bf16.msra.mxu0 %v3623_v3  ;;  %v3627_v0 = vld [vmem:[%s4867_s2 + $0xc8] sm:$0xff] }
  0xfa   : > { %3124 = vmatmul.msk.bf16.gmra.mxu3 %vm598_vm2, %v1572_v4  ;;  %v903_v7 = vadd.f32 %v892_v21, %v704_v6  ;;  %v887_v18 = vpop.f32.mrf.mxu2 }
  0xfb   : > { %v901_v21 = vadd.f32 %v887_v18, %v699_v19  ;;  %v3611_v18 = vld [vmem:[%s4867_s2 + $0x48] sm:$0xff]  ;;  %v3605_v19 = vld [vmem:[%s4867_s2 + $0x18] sm:$0xff] }
  0xfd   : > { %v965_v12 = vpop.f32.mrf.mxu3  ;;  %1882 = vmatpush.bf16.msra.mxu2 %v3611_v18 }
  0xfe   : > { %v4207_v13 = vadd.f32 %v965_v12, %v899_v11  ;;  %v3622_v11 = vld [vmem:[%s4867_s2 + $0xa0] sm:$0xff]  ;;  %v3632_v12 = vld [vmem:[%s4867_s2 + $0xf0] sm:$0xff] }
  0xff   : > { %v4211_v8 = vpop.f32.mrf.mxu0  ;;  %v4281_v61 = vpop.f32.mrf.mxu1  ;;  %2062 = vmatpush.bf16.msra.mxu0 %v3622_v11 }
 0x102   : > { %v4274_v56 = vpop.f32.mrf.mxu2 }
 0x105   : > { %v4213_v15 = vpop.f32.mrf.mxu3 }
 0x107   : > { %v688_v16 = vpop.f32.mrf.mxu0 }
 0x108   : > { %v689_v17 = vadd.f32 %v688_v16, %v4149_v24  ;;  %v1722_v24 = vsel %vm611_vm0, %v1688_v26, 0  ;;  %v3604_v26 = vld [vmem:[%s4867_s2 + $0x10] sm:$0xff] }
 0x109   : > { %1731 = vmatpush.bf16.msra.mxu1 %v1722_v24  ;;  %v3620_v24 = vld [vmem:[%s4867_s2 + $0x90] sm:$0xff] }
 0x10a   : > { %v897_v20 = vadd.f32 %v877_v32, %v689_v17  ;;  %v3136_v32 = vor.u32 %v3598_v30, %v3135_v29  ;;  %v4300_v6 = vpop.f32.mrf.mxu2  ;;  %v3793_v17 = vmov 0.0   ;;  %v3630_v29 = vld [vmem:[%s4867_s2 + $0xe0] sm:$0xff] }
 0x10b   : > { %1653 = vst [vmem:[#allocation2 + $0x10] sm:$0xff] %v3793_v17 }
 0x10c   : > { %v4216_v22 = vadd.f32 %v960_v59, %v897_v20  ;;  %3149 = vmatmul.msk.bf16.vlgmr.msra.gmra.mxu1 %vm598_vm2, %v3136_v32  ;;  %v3600_v59 = vld [vmem:[%s3974_s26 + $0xfc] sm:$0xf0]  ;;  %1654 = vst [vmem:[#allocation2 + $0x18] sm:$0x3] %v3793_v17  ;;  %v3621_v20 = vld [vmem:[%s4867_s2 + $0x98] sm:$0xff] }
 0x10d   : > { %v970_v9 = vpop.f32.mrf.mxu3  ;;  %v3144_v63 = vor.u32 %v3600_v59, %v3143_v58  ;;  %2173 = vmatpush.bf16.msrb.mxu1 %v3633_v5  ;;  %1651 = vst [vmem:[#allocation2] sm:$0xff] %v3793_v17  ;;  %2063 = vmatpush.bf16.msra.mxu0 %v3621_v20  ;;  %v3610_v32 = vld [vmem:[%s4867_s2 + $0x40] sm:$0xff]  ;;  %v3628_v58 = vld [vmem:[%s4867_s2 + $0xd0] sm:$0xff] }
 0x10e   : > { %v4218_v23 = vadd.f32 %v970_v9, %v901_v21  ;;  %v4324_v21 = vpop.f32.mrf.mxu1  ;;  %1652 = vst [vmem:[#allocation2 + $0x8] sm:$0x3] %v3793_v17  ;;  %1883 = vmatpush.bf16.msra.mxu2 %v3610_v32 }
 0x10f   : > { %v4226_v28 = vpop.f32.mrf.mxu0  ;;  %1655 = vst [vmem:[#allocation2 + $0x20] sm:$0xff] %v3793_v17 }
 0x110   : > { %1656 = vst [vmem:[#allocation2 + $0x28] sm:$0x3] %v3793_v17  ;;  %v691_v51 = vadd.f32 %v4226_v28, %v4161_v43 }
 0x111   : > { %2174 = vmatpush.bf16.msrb.mxu1 %v3632_v12  ;;  %1657 = vst [vmem:[#allocation2 + $0x30] sm:$0xff] %v3793_v17  ;;  %2064 = vmatpush.bf16.msra.mxu0 %v3620_v24 }
 0x112   : > { %v4344_v30 = vpop.f32.mrf.mxu2  ;;  %1658 = vst [vmem:[#allocation2 + $0x38] sm:$0x3] %v3793_v17 }
 0x113   : > { %1659 = vst [vmem:[#allocation2 + $0x40] sm:$0xff] %v3793_v17 }
 0x114   : > { %1660 = vst [vmem:[#allocation2 + $0x48] sm:$0x3] %v3793_v17 }
 0x115   : > { %v4231_v31 = vpop.f32.mrf.mxu3  ;;  %2175 = vmatpush.bf16.msrb.mxu1 %v3631_v25  ;;  %1661 = vst [vmem:[#allocation2 + $0x50] sm:$0xff] %v3793_v17 }
 0x116   : > { %1662 = vst [vmem:[#allocation2 + $0x58] sm:$0x3] %v3793_v17  ;;  %v1242_v50 = vpop.f32.mrf.mxu1 }
 0x117   : > { %v4236_v34 = vpop.f32.mrf.mxu0  ;;  %1663 = vst [vmem:[#allocation2 + $0x60] sm:$0xff] %v3793_v17 }
 0x118   : > { %1664 = vst [vmem:[#allocation2 + $0x68] sm:$0x3] %v3793_v17  ;;  %v1063_v59 = vadd.f32 %v4236_v34, %v4216_v22 }
 0x119   : > { %2176 = vmatpush.bf16.msrb.mxu1 %v3630_v29  ;;  %1665 = vst [vmem:[#allocation2 + $0x70] sm:$0xff] %v3793_v17  ;;  %v696_v29 = vadd.f32 %v4171_v10, %v4185_v27 }
 0x11a   : > { %1666 = vst [vmem:[#allocation2 + $0x78] sm:$0x3] %v3793_v17  ;;  %v1325_v43 = vpop.f32.mrf.mxu2  ;;  %v1257_v22 = vadd.f32 %v4281_v61, %v1063_v59  ;;  %v4413_v61 = vld [vmem:[%s4869_s4] ss:$0 sm:$0xff] }
 0x11b   : > { %1667 = vst [vmem:[#allocation2 + $0x80] sm:$0xff] %v3793_v17 }
 0x11c   : > { %3150 = vmatmul.msk.bf16.gmra.mxu1 %vm598_vm2, %v3140_v42  ;;  %v3619_v42 = vld [vmem:[%s4867_s2 + $0x88] sm:$0xff]  ;;  %1668 = vst [vmem:[#allocation2 + $0x88] sm:$0x3] %v3793_v17  ;;  %v1340_v5 = vadd.f32 %v4300_v6, %v1257_v22 }
 0x11d   : > { %v975_v35 = vpop.f32.mrf.mxu3  ;;  %2065 = vmatpush.bf16.msra.mxu0 %v3619_v42  ;;  %2177 = vmatpush.bf16.msrb.mxu1 %v3629_v44  ;;  %1669 = vst [vmem:[#allocation2 + $0x90] sm:$0xff] %v3793_v17 }
 0x11e   : > { %v4239_v36 = vadd.f32 %v975_v35, %v903_v7  ;;  %v3606_v7 = vld [vmem:[%s4867_s2 + $0x20] sm:$0xff]  ;;  %v3601_v35 = vld [vmem:[%s3974_s26 + $0x10c] sm:$0xf0]  ;;  %1670 = vst [vmem:[#allocation2 + $0x98] sm:$0x3] %v3793_v17  ;;  %v1244_v3 = vpop.f32.mrf.mxu1  ;;  %s3674_s26 = sshll.u32 %s2906_s22, 6 }
 0x11f   : > { %v4244_v38 = vpop.f32.mrf.mxu0  ;;  %1956 = vmatpush.bf16.msra.mxu3 %v3606_v7  ;;  %v3148_v39 = vor.u32 %v3601_v35, %v3147_v33  ;;  %v1799_v33 = vld [vmem:[#allocation2 + $0x1] sm:$0xff]  ;;  %s2835_s25 = scalar_lea.hbm %s4870_s5, %s3674_s26  ;;  %s2836_s22 = sshll.u32 %s4768_s16, 4  ;;  %s2837_s22 = int_to_ptr.vmem [resolvable:$true] %s2836_s22 }
 0x120   : > { %s2838_s30 = sshll.u32 %s2835_s25, 4  ;;  %s2839_s30 = int_to_ptr.hbm [resolvable:$true] %s2838_s30 }
 0x121   : > { %2066 = vmatpush.bf16.msra.mxu0 %v3618_v57  ;;  %2178 = vmatpush.bf16.msrb.mxu1 %v3628_v58  ;;  %s3743_s7 = sshra.s32 %s2839_s30, 4  ;;  %s3744_s7 = int_to_ptr.hbm [resolvable:$true] %s3743_s7 }
 0x122   : > { %v1327_v18 = vpop.f32.mrf.mxu2  ;;  %s3745_s8 = scalar_lea.hbm %s3744_s7, 64  ;;  %p3750_p2 = scmp.lt.s32.totalorder %s3744_s7, %s4870_s5 }
 0x123   : > { %1957 = vmatpush.bf16.msra.mxu3 %v3605_v19  ;;  %p3746_p13 = scmp.ne.s32.totalorder %s3744_s7, %s3745_s8  ;;  %p3751_p3 = scmp.lt.s32.totalorder %s3749_s11, %s3745_s8 }
 0x125   : > { %v4248_v41 = vpop.f32.mrf.mxu3  ;;  %2179 = vmatpush.bf16.msrb.mxu1 %v3627_v0  ;;  %p3747_p0 = pnand %p3746_p13, %p3864_p6  ;;  %p3752_p4 = por %p3751_p3, %p3750_p2 }
 0x127   : > { %v4253_v46 = vpop.f32.mrf.mxu0  ;;  %1958 = vmatpush.bf16.msra.mxu3 %v3604_v26  ;;  %p3748_p1 = pneg %p3747_p0 }
 0x128   : > { %v1065_v26 = vadd.f32 %v4253_v46, %v4207_v13 }
 0x129   : > { %p3753_p5 = pnand %p3752_p4, %p3748_p1 }
 0x12a   : > { %v1259_v46 = vadd.f32 %v1242_v50, %v1065_v26  ;;  %v1330_v44 = vpop.f32.mrf.mxu2  ;;  %v3649_v26 = vld [vmem:[%s4867_s2 + $0x178] sm:$0xff] }
 0x12b   : > { %1959 = vmatpush.bf16.msra.mxu3 %v3603_v40  ;;  %v900_v40 = vadd.f32 %v4209_v14, %v696_v29  ;;  %v701_v14 = vadd.f32 %v4195_v54, %v4197_v60 }
 0x12c   : > { %3151 = vmatmul.msk.bf16.gmra.mxu1 %vm598_vm2, %v3144_v63  ;;  %v898_v63 = vadd.f32 %v4191_v53, %v691_v51  ;;  %v3626_v53 = vld [vmem:[%s4867_s2 + $0xc0] sm:$0xff] }
 0x12d   : > { %v4258_v48 = vpop.f32.mrf.mxu3  ;;  %2180 = vmatpush.bf16.msrb.mxu1 %v3626_v53  ;;  %v983_v27 = vadd.f32 %v4213_v15, %v900_v40  ;;  %v902_v58 = vadd.f32 %v4274_v56, %v701_v14  ;;  %v1982_v15 = vld [vmem:[#allocation2 + $0x2] sm:$0xff]  ;;  %v3636_v14 = vld [vmem:[%s4867_s2 + $0x110] sm:$0xff] }
 0x12e   : > { %v981_v34 = vadd.f32 %v4203_v2, %v898_v63  ;;  %v1423_v12 = vadd.f32 %v4258_v48, %v1340_v5  ;;  %v3641_v2 = vld [vmem:[%s4867_s2 + $0x138] sm:$0xff] }
 0x12f   : > { %v4269_v52 = vpop.f32.mrf.mxu0  ;;  %1960 = vmatpush.bf16.msra.mxu3 %v3602_v55  ;;  %2287 = vmatpush.bf16.msrb.mxu2 %v3641_v2  ;;  %v1342_v55 = vadd.f32 %v1325_v43, %v1259_v46  ;;  %v985_v54 = vadd.f32 %v4231_v31, %v902_v58  ;;  %v3648_v46 = vld [vmem:[%s4867_s2 + $0x170] sm:$0xff] }
 0x130   : > { %v1064_v7 = vadd.f32 %v4244_v38, %v981_v34  ;;  %v4422_v38 = vld [vmem:[%s4869_s4 + $0x1] ss:$0 sm:$0xff]  ;;  %v1066_v50 = vadd.f32 %v4269_v52, %v983_v27 }
 0x132   : > { %v1258_v6 = vadd.f32 %v4324_v21, %v1064_v7  ;;  %v1247_v21 = vpop.f32.mrf.mxu1  ;;  %v1260_v60 = vadd.f32 %v1244_v3, %v1066_v50  ;;  %v1332_v31 = vpop.f32.mrf.mxu2  ;;  %v3647_v50 = vld [vmem:[%s4867_s2 + $0x168] sm:$0xff] }
 0x133   : > { %2401 = vmatpush.bf16.msrb.mxu3 %v3649_v26 }
 0x134   : > { %v1341_v25 = vadd.f32 %v4344_v30, %v1258_v6  ;;  %v3640_v30 = vld [vmem:[%s4867_s2 + $0x130] sm:$0xff]  ;;  %v1343_v3 = vadd.f32 %v1327_v18, %v1260_v60 }
 0x135   : > { %v4283_v62 = vpop.f32.mrf.mxu3  ;;  %2288 = vmatpush.bf16.msrb.mxu2 %v3640_v30 }
 0x136   : > { %v1424_v35 = vadd.f32 %v4283_v62, %v1341_v25 }
 0x137   : > { %v4294_v4 = vpop.f32.mrf.mxu0  ;;  %2402 = vmatpush.bf16.msrb.mxu3 %v3648_v46 }
 0x138   : > { %v1067_v62 = vadd.f32 %v4294_v4, %v4218_v23  ;;  %v3639_v4 = vld [vmem:[%s4867_s2 + $0x128] sm:$0xff] }
 0x139   : > { %2289 = vmatpush.bf16.msrb.mxu2 %v3639_v4 }
 0x13a   : > { %v1261_v0 = vadd.f32 %v1247_v21, %v1067_v62  ;;  %v1249_v52 = vpop.f32.mrf.mxu1 }
 0x13b   : > { %2403 = vmatpush.bf16.msrb.mxu3 %v3647_v50 }
 0x13c   : > { %3152 = vmatmul.msk.bf16.gmra.mxu1 %vm598_vm2, %v3148_v39  ;;  %v1344_v7 = vadd.f32 %v1330_v44, %v1261_v0 }
 0x13d   : > { %v4311_v16 = vpop.f32.mrf.mxu3 }
 0x13e   : > { %v1425_v63 = vadd.f32 %v4311_v16, %v1342_v55 }
 0x13f   : > { %v4326_v9 = vpop.f32.mrf.mxu0 }
 0x140   : > { %v1068_v5 = vadd.f32 %v4326_v9, %v985_v54  ;;  %v3638_v9 = vld [vmem:[%s4867_s2 + $0x120] sm:$0xff] }
 0x141   : > { %2290 = vmatpush.bf16.msrb.mxu2 %v3638_v9  ;;  %v3662_v9 = vld [vmem:[%s4867_s2 + $0x1e0] sm:$0xff] }
 0x142   : > { %v1262_v6 = vadd.f32 %v1249_v52, %v1068_v5  ;;  %v1252_v40 = vpop.f32.mrf.mxu1 }
 0x144   : > { %v1345_v30 = vadd.f32 %v1332_v31, %v1262_v6 }
 0x145   : > { %v4353_v37 = vpop.f32.mrf.mxu3 }
 0x147   : > { %v4366_v49 = vpop.f32.mrf.mxu0 }
 0x14a   : > { %v1254_v5 = vpop.f32.mrf.mxu1 }
 0x14d   : > { %v4388_v28 = vpop.f32.mrf.mxu3 }
 0x14e   : > { %v1427_v2 = vadd.f32 %v4388_v28, %v1344_v7  ;;  %v3657_v28 = vld [vmem:[%s4867_s2 + $0x1b8] sm:$0xff]  ;;  %v3654_v7 = vld [vmem:[%s4867_s2 + $0x1a0] sm:$0xff] }
 0x14f   : > { %v4396_v1 = vpop.f32.mrf.mxu0  ;;  %2516 = vmatpush.bf16.msrb.mxu0 %v3657_v28  ;;  %v3644_v28 = vld [vmem:[%s4867_s2 + $0x150] sm:$0xff] }
 0x155   : > { %v4407_v11 = vpop.f32.mrf.mxu3 }
 0x156   : > { %v1428_v44 = vadd.f32 %v4407_v11, %v1345_v30  ;;  %v3661_v30 = vld [vmem:[%s4867_s2 + $0x1d8] sm:$0xff] }
 0x157   : > { %v1597_v19 = vpop.f32.mrf.mxu0 }
 0x158   : > { %v1617_v20 = vadd.f32 %v1597_v19, %v1423_v12 }
 0x15a   : > { %v1626_v48 = vmul.f32 %v4413_v61, %v1617_v20 }
 0x15c   : > { %v1635_v24 = vadd.f32 %v4422_v38, %v1626_v48 }
 0x15d   : > { %v4431_v32 = vpop.f32.mrf.mxu3 }
 0x15e   : > { %v4434_v39 = vmax.f32 %v1635_v24, 0.0 }
 0x15f   : > { %v1599_v13 = vpop.f32.mrf.mxu0 }
 0x160   : > { %1672 = vst [vmem:[#allocation2 + $0x11] sm:$0xff] %v4434_v39  ;;  %v1618_v42 = vadd.f32 %v1599_v13, %v1424_v35  ;;  %v1807_v10 = vpack.c.bf16 %v4434_v39, %v1799_v33  ;;  %v706_v35 = vadd.f32 %v4256_v47, %v4211_v8  ;;  %v3637_v13 = vld [vmem:[%s4867_s2 + $0x118] sm:$0xff]  ;;  %v3656_v8 = vld [vmem:[%s4867_s2 + $0x1b0] sm:$0xff] }
 0x161   : > { %v3665_v47 = vld [vmem:[%s4867_s2 + $0x1f8] sm:$0xff]  ;;  %2291 = vmatpush.bf16.msrb.mxu2 %v3637_v13  ;;  %2517 = vmatpush.bf16.msrb.mxu0 %v3656_v8 }
 0x162   : > { %v1627_v51 = vmul.f32 %v4413_v61, %v1618_v42  ;;  %1884 = vmatmul.bf16.vlgmr.msra.gmra.mxu2 %v1807_v10  ;;  %v1069_v42 = vadd.f32 %v4366_v49, %v4239_v36  ;;  %v1335_v49 = vpop.f32.mrf.mxu2  ;;  %v904_v55 = vadd.f32 %v4189_v45, %v706_v35  ;;  %2630 = vmatpush.bf16.msra.mxu1 %v3665_v47  ;;  %v3664_v45 = vld [vmem:[%s4867_s2 + $0x1f0] sm:$0xff] }
 0x163   : > { %v3652_v35 = vld [vmem:[%s4867_s2 + $0x190] sm:$0xff] }
 0x164   : > { %v1636_v57 = vadd.f32 %v4422_v38, %v1627_v51  ;;  %v987_v54 = vadd.f32 %v4248_v41, %v904_v55  ;;  %v3673_v55 = vld [vmem:[%s4867_s2 + $0x238] sm:$0xff] }
 0x165   : > { %v4451_v59 = vpop.f32.mrf.mxu3  ;;  %2292 = vmatpush.bf16.msrb.mxu2 %v3636_v14  ;;  %v3642_v14 = vld [vmem:[%s4867_s2 + $0x140] sm:$0xff] }
 0x166   : > { %v4454_v23 = vmax.f32 %v1636_v57, 0.0  ;;  %v1263_v57 = vadd.f32 %v1252_v40, %v1069_v42  ;;  %2631 = vmatpush.bf16.msra.mxu1 %v3664_v45 }
 0x167   : > { %v1602_v43 = vpop.f32.mrf.mxu0  ;;  %v1772_v22 = vld [vmem:[#allocation2 + $0x10] sm:$0xff] }
 0x168   : > { %v4460_v34 = vld [vmem:[#allocation2 + $0x12] sm:$0xff]  ;;  %1673 = vst [vmem:[#allocation2 + $0x21] sm:$0xff] %v4454_v23  ;;  %v1619_v56 = vadd.f32 %v1602_v43, %v1425_v63  ;;  %v1779_v16 = vpack.c.bf16 %v1772_v22, %v3793_v17  ;;  %v1426_v17 = vadd.f32 %v4353_v37, %v1343_v3  ;;  %v3655_v63 = vld [vmem:[%s4867_s2 + $0x1a8] sm:$0xff] }
 0x169   : > { %v1990_v53 = vpack.c.bf16 %v4460_v34, %v1982_v15  ;;  %2518 = vmatpush.bf16.msrb.mxu0 %v3655_v63 }
 0x16a   : > { %v1628_v12 = vmul.f32 %v4413_v61, %v1619_v56  ;;  %1961 = vmatmul.bf16.vlgmr.msra.gmra.mxu3 %v1779_v16  ;;  %v1346_v56 = vadd.f32 %v1335_v49, %v1263_v57  ;;  %v1070_v16 = vadd.f32 %v4396_v1, %v987_v54  ;;  %v3663_v1 = vld [vmem:[%s4867_s2 + $0x1e8] sm:$0xff] }
 0x16b   : > { %2067 = vmatmul.bf16.vlgmr.msra.gmra.mxu0 %v1990_v53  ;;  %v3635_v53 = vld [vmem:[%s4867_s2 + $0x108] sm:$0xff]  ;;  %2632 = vmatpush.bf16.msra.mxu1 %v3663_v1 }
 0x16c   : > { %v1637_v19 = vadd.f32 %v4422_v38, %v1628_v12  ;;  %v1429_v12 = vadd.f32 %v4431_v32, %v1346_v56  ;;  %2293 = vmatpush.bf16.msrb.mxu2 %v3635_v53  ;;  %v3653_v32 = vld [vmem:[%s4867_s2 + $0x198] sm:$0xff]  ;;  %v3659_v57 = vld [vmem:[%s4867_s2 + $0x1c8] sm:$0xff] }
 0x16d   : > { %v1607_v20 = vpop.f32.mrf.mxu3  ;;  %2519 = vmatpush.bf16.msrb.mxu0 %v3654_v7 }
 0x16e   : > { %v4470_v48 = vmax.f32 %v1637_v19, 0.0  ;;  %v1621_v25 = vadd.f32 %v1607_v20, %v1427_v2  ;;  %v3645_v2 = vld [vmem:[%s4867_s2 + $0x158] sm:$0xff]  ;;  %v1264_v19 = vadd.f32 %v1254_v5, %v1070_v16  ;;  %v3671_v5 = vld [vmem:[%s4867_s2 + $0x228] sm:$0xff] }
 0x16f   : > { %v1604_v18 = vpop.f32.mrf.mxu0  ;;  %v2097_v24 = vld [vmem:[#allocation2 + $0x20] sm:$0xff]  ;;  %2633 = vmatpush.bf16.msra.mxu1 %v3662_v9 }
 0x170   : > { %1674 = vst [vmem:[#allocation2 + $0x31] sm:$0xff] %v4470_v48  ;;  %v1630_v37 = vmul.f32 %v4413_v61, %v1621_v25  ;;  %v1620_v29 = vadd.f32 %v1604_v18, %v1426_v17  ;;  %v2104_v21 = vpack.c.bf16 %v2097_v24, %v1772_v22  ;;  %v4485_v33 = vpack.c.bf16 %v4470_v48, %v4454_v23  ;;  %v4520_v15 = vld [vmem:[#allocation2 + $0x22] sm:$0xff]  ;;  %v1337_v17 = vpop.f32.mrf.mxu2 }
 0x171   : > { %v3646_v22 = vld [vmem:[%s4867_s2 + $0x160] sm:$0xff]  ;;  %2520 = vmatpush.bf16.msrb.mxu0 %v3653_v32 }
 0x172   : > { %v1639_v10 = vadd.f32 %v4422_v38, %v1630_v37  ;;  %v1629_v27 = vmul.f32 %v4413_v61, %v1620_v29  ;;  %2181 = vmatmul.bf16.vlgmr.msrb.gmra.mxu1 %v2104_v21  ;;  %1889 = vmatmul.bf16.gmra.mxu2 %v4485_v33  ;;  %v1347_v37 = vadd.f32 %v1337_v17, %v1264_v19  ;;  %v3634_v21 = vld [vmem:[%s4867_s2 + $0x100] sm:$0xff]  ;;  %v3669_v19 = vld [vmem:[%s4867_s2 + $0x218] sm:$0xff] }
 0x173   : > { %2404 = vmatpush.bf16.msrb.mxu3 %v3646_v22  ;;  %2294 = vmatpush.bf16.msrb.mxu2 %v3634_v21 }
 0x174   : > { %v4507_v62 = vmax.f32 %v1639_v10, 0.0  ;;  %v1638_v36 = vadd.f32 %v4422_v38, %v1629_v27  ;;  %v1430_v40 = vadd.f32 %v4451_v59, %v1347_v37  ;;  %v3643_v10 = vld [vmem:[%s4867_s2 + $0x148] sm:$0xff]  ;;  %2634 = vmatpush.bf16.msra.mxu1 %v3661_v30 }
 0x175   : > { %v1609_v51 = vpop.f32.mrf.mxu3  ;;  %2521 = vmatpush.bf16.msrb.mxu0 %v3652_v35  ;;  %v3651_v59 = vld [vmem:[%s4867_s2 + $0x188] sm:$0xff] }
 0x176   : > { %1676 = vst [vmem:[#allocation2 + $0x51] sm:$0xff] %v4507_v62  ;;  %v4518_v11 = vmax.f32 %v1638_v36, 0.0  ;;  %v1622_v58 = vadd.f32 %v1609_v51, %v1428_v44  ;;  %v3660_v44 = vld [vmem:[%s4867_s2 + $0x1d0] sm:$0xff] }
 0x177   : > { %v1774_v0 = vld [vmem:[#allocation2 + $0x30] sm:$0xff]  ;;  %2405 = vmatpush.bf16.msrb.mxu3 %v3645_v2  ;;  %2744 = vmatpush.bf16.msra.mxu2 %v3673_v55  ;;  %v2332_v2 = vpack.c.bf16 %v4520_v15, %v4460_v34 }
 0x178   : > { %v4525_v4 = vld [vmem:[#allocation2 + $0x32] sm:$0xff]  ;;  %1675 = vst [vmem:[#allocation2 + $0x41] sm:$0xff] %v4518_v11  ;;  %v1631_v60 = vmul.f32 %v4413_v61, %v1622_v58  ;;  %v4533_v52 = vpack.c.bf16 %v1774_v0, %v2097_v24  ;;  %v4573_v24 = vpack.c.bf16 %v4507_v62, %v4518_v11  ;;  %2635 = vmatpush.bf16.msra.mxu1 %v3660_v44 }
 0x179   : > { %v4537_v43 = vpack.c.bf16 %v4525_v4, %v4520_v15  ;;  %2522 = vmatpush.bf16.msrb.mxu0 %v3651_v59  ;;  %v3667_v15 = vld [vmem:[%s4867_s2 + $0x208] sm:$0xff] }
 0x17a   : > { %v1640_v41 = vadd.f32 %v4422_v38, %v1631_v60  ;;  %1966 = vmatmul.bf16.gmra.mxu3 %v4533_v52  ;;  %v3672_v60 = vld [vmem:[%s4867_s2 + $0x230] sm:$0xff] }
 0x17b   : > { %2072 = vmatmul.bf16.gmra.mxu0 %v4537_v43  ;;  %2406 = vmatpush.bf16.msrb.mxu3 %v3644_v28 }
 0x17c   : > { %v4556_v31 = vmax.f32 %v1640_v41, 0.0  ;;  %2636 = vmatpush.bf16.msra.mxu1 %v3659_v57  ;;  %2745 = vmatpush.bf16.msra.mxu2 %v3672_v60 }
 0x17d   : > { %v1612_v3 = vpop.f32.mrf.mxu3  ;;  %v1776_v8 = vld [vmem:[#allocation2 + $0x50] sm:$0xff] }
 0x17e   : > { %1677 = vst [vmem:[#allocation2 + $0x61] sm:$0xff] %v4556_v31  ;;  %v1623_v6 = vadd.f32 %v1612_v3, %v1429_v12  ;;  %v2220_v20 = vpack.c.bf16 %v4556_v31, %v4507_v62  ;;  %v4598_v47 = vld [vmem:[#allocation2 + $0x52] sm:$0xff]  ;;  %v2218_v12 = vpack.c.bf16 %v4454_v23, %v4434_v39  ;;  %v3670_v3 = vld [vmem:[%s4867_s2 + $0x220] sm:$0xff]  ;;  %v2219_v39 = vpack.c.bf16 %v4518_v11, %v4470_v48 }
 0x17f   : > { %v2099_v25 = vld [vmem:[#allocation2 + $0x40] sm:$0xff]  ;;  %2407 = vmatpush.bf16.msrb.mxu3 %v3643_v10  ;;  %v3668_v23 = vld [vmem:[%s4867_s2 + $0x210] sm:$0xff] }
 0x180   : > { %v1632_v26 = vmul.f32 %v4413_v61, %v1623_v6  ;;  %v2105_v18 = vpack.c.bf16 %v2099_v25, %v1774_v0  ;;  %v4592_v42 = vld [vmem:[#allocation2 + $0x42] sm:$0xff]  ;;  %v1781_v49 = vpack.c.bf16 %v1776_v8, %v2099_v25  ;;  %2746 = vmatpush.bf16.msra.mxu2 %v3671_v5 }
 0x181   : > { %v4609_v51 = vpack.c.bf16 %v4598_v47, %v4592_v42  ;;  %v3658_v0 = vld [vmem:[%s4867_s2 + $0x1c0] sm:$0xff]  ;;  %v2333_v34 = vpack.c.bf16 %v4592_v42, %v4525_v4  ;;  %v2674_v42 = vld [vmem:[#allocation2 + $0x92] sm:$0xff] }
 0x182   : > { %v1641_v29 = vadd.f32 %v4422_v38, %v1632_v26  ;;  %2186 = vmatmul.bf16.gmra.mxu1 %v2105_v18  ;;  %1894 = vmatmul.bf16.gmra.mxu2 %v4573_v24 }
 0x183   : > { %2408 = vmatpush.bf16.msrb.mxu3 %v3642_v14  ;;  %2637 = vmatpush.bf16.msra.mxu1 %v3658_v0 }
 0x184   : > { %v4590_v13 = vmax.f32 %v1641_v29, 0.0  ;;  %2747 = vmatpush.bf16.msra.mxu2 %v3670_v3 }
 0x185   : > { %v1614_v46 = vpop.f32.mrf.mxu3  ;;  %v1988_v16 = vld [vmem:[#allocation2 + $0x62] sm:$0xff] }
 0x186   : > { %1678 = vst [vmem:[#allocation2 + $0x71] sm:$0xff] %v4590_v13  ;;  %v1624_v27 = vadd.f32 %v1614_v46, %v1430_v40  ;;  %v1810_v54 = vpack.c.bf16 %v4590_v13, %v4556_v31  ;;  %v2334_v4 = vpack.c.bf16 %v1988_v16, %v4598_v47  ;;  %v2560_v31 = vld [vmem:[#allocation2 + $0x91] sm:$0xff] }
 0x188   : > { %v1633_v36 = vmul.f32 %v4413_v61, %v1624_v27  ;;  %v3650_v61 = vld [vmem:[%s4867_s2 + $0x180] sm:$0xff]  ;;  %2748 = vmatpush.bf16.msra.mxu2 %v3669_v19 }
 0x189   : > { %2523 = vmatpush.bf16.msrb.mxu0 %v3650_v61  ;;  %v4658_v6 = vpop.f32.mrf.mxu1 }
 0x18a   : > { %v1642_v50 = vadd.f32 %v4422_v38, %v1633_v36  ;;  %1971 = vmatmul.bf16.gmra.mxu3 %v1781_v49  ;;  %v2101_v38 = vld [vmem:[#allocation2 + $0x60] sm:$0xff] }
 0x18b   : > { %2077 = vmatmul.bf16.gmra.mxu0 %v4609_v51  ;;  %v2106_v45 = vpack.c.bf16 %v2101_v38, %v1776_v8 }
 0x18c   : > { %v4625_v58 = vmax.f32 %v1642_v50, 0.0  ;;  %2749 = vmatpush.bf16.msra.mxu2 %v3668_v23 }
 0x18d   : > { %v1778_v22 = vld [vmem:[#allocation2 + $0x70] sm:$0xff] }
 0x18e   : > { %1679 = vst [vmem:[#allocation2 + $0x81] sm:$0xff] %v4625_v58  ;;  %v2221_v63 = vpack.c.bf16 %v4625_v58, %v4590_v13  ;;  %v1989_v56 = vld [vmem:[#allocation2 + $0x72] sm:$0xff]  ;;  %v1782_v41 = vpack.c.bf16 %v1778_v22, %v2101_v38 }
 0x18f   : > { %v1993_v53 = vpack.c.bf16 %v1989_v56, %v1988_v16 }
 0x190   : > { %2750 = vmatpush.bf16.msra.mxu2 %v3667_v15 }
 0x191   : > { %v4665_v48 = vpop.f32.mrf.mxu1 }
 0x192   : > { %2191 = vmatmul.bf16.gmra.mxu1 %v2106_v45  ;;  %1899 = vmatmul.bf16.gmra.mxu2 %v1810_v54 }
 0x195   : > { %v2103_v7 = vld [vmem:[#allocation2 + $0x80] sm:$0xff] }
 0x196   : > { %v2107_v1 = vpack.c.bf16 %v2103_v7, %v1778_v22  ;;  %v2331_v17 = vld [vmem:[#allocation2 + $0x82] sm:$0xff]  ;;  %v2450_v32 = vpack.c.bf16 0.0, %v2103_v7 }
 0x197   : > { %v2335_v25 = vpack.c.bf16 %v2331_v17, %v1989_v56  ;;  %v2678_v8 = vpack.c.bf16 %v2674_v42, %v2331_v17 }
 0x199   : > { %v4674_v11 = vpop.f32.mrf.mxu1 }
 0x19a   : > { %1976 = vmatmul.bf16.gmra.mxu3 %v1782_v41 }
 0x19b   : > { %2082 = vmatmul.bf16.gmra.mxu0 %v1993_v53 }
 0x1a2   : > { %2196 = vmatmul.bf16.gmra.mxu1 %v2107_v1  ;;  %2295 = vmatmul.bf16.vlgmr.msrb.gmra.mxu2 %v2218_v12 }
 0x1aa   : > { %2409 = vmatmul.bf16.vlgmr.msrb.gmra.mxu3 %v2332_v2 }
 0x1ab   : > { %2524 = vmatmul.bf16.vlgmr.msrb.gmra.mxu0 %v4533_v52  ;;  %v4677_v52 = vpop.f32.mrf.mxu1 }
 0x1b2   : > { %2638 = vmatmul.bf16.vlgmr.msra.gmra.mxu1 %v4485_v33  ;;  %2300 = vmatmul.bf16.gmra.mxu2 %v2219_v39  ;;  %v3666_v33 = vld [vmem:[%s4867_s2 + $0x200] sm:$0xff] }
 0x1b3   : > { %2751 = vmatpush.bf16.msra.mxu2 %v3666_v33  ;;  %v4679_v62 = vpop.f32.mrf.mxu1 }
 0x1ba   : > { %2414 = vmatmul.bf16.gmra.mxu3 %v2333_v34 }
 0x1bb   : > { %2529 = vmatmul.bf16.gmra.mxu0 %v1781_v49  ;;  %v4683_v26 = vpop.f32.mrf.mxu1 }
 0x1c2   : > { %2643 = vmatmul.bf16.gmra.mxu1 %v4573_v24  ;;  %2305 = vmatmul.bf16.gmra.mxu2 %v2220_v20  ;;  %v2564_v20 = vpack.c.bf16 %v2560_v31, %v4625_v58 }
 0x1c3   : > { %v4685_v24 = vpop.f32.mrf.mxu1 }
 0x1ca   : > { %2419 = vmatmul.bf16.gmra.mxu3 %v2334_v4 }
 0x1cb   : > { %2534 = vmatmul.bf16.gmra.mxu0 %v1782_v41  ;;  %v4688_v37 = vpop.f32.mrf.mxu1 }
 0x1cc   : > { %4875 = vst [vmem:[#allocation7_spill] sm:$0xff] %v4688_v37 }
 0x1d2   : > { %2648 = vmatmul.bf16.gmra.mxu1 %v1810_v54  ;;  %2310 = vmatmul.bf16.gmra.mxu2 %v2221_v63 }
 0x1da   : > { %2424 = vmatmul.bf16.gmra.mxu3 %v2335_v25 }
 0x1db   : > { %2539 = vmatmul.bf16.gmra.mxu0 %v2450_v32 }
 0x1e2   : > { %2653 = vmatmul.bf16.gmra.mxu1 %v2564_v20  ;;  %2752 = vmatmul.bf16.vlgmr.msra.gmra.mxu2 %v4537_v43 }
 0x1e5   : > { %v1885_v9 = vpop.f32.mrf.mxu2 }
 0x1e8   : > { %v2068_v35 = vpop.f32.mrf.mxu0 }
 0x1ed   : > { %v1887_v18 = vpop.f32.mrf.mxu2  ;;  %v1962_v29 = vpop.f32.mrf.mxu3 }
 0x1ee   : > { %v1963_v12 = vadd.f32 %v1962_v29, %v1885_v9  ;;  %v4739_v9 = vld [vmem:[%s4869_s4 + $0x4] ss:$0 sm:$0xff] }
 0x1ef   : > { %v2182_v30 = vpop.f32.mrf.mxu1 }
 0x1f0   : > { %v2070_v43 = vpop.f32.mrf.mxu0  ;;  %v2088_v2 = vadd.f32 %v2068_v35, %v1963_v12 }
 0x1f2   : > { %2757 = vmatmul.bf16.gmra.mxu2 %v4609_v51  ;;  %v2202_v34 = vadd.f32 %v2182_v30, %v2088_v2 }
 0x1f5   : > { %v1890_v28 = vpop.f32.mrf.mxu2  ;;  %v1964_v40 = vpop.f32.mrf.mxu3 }
 0x1f6   : > { %v1965_v15 = vadd.f32 %v1964_v40, %v1887_v18  ;;  %v4744_v40 = vld [vmem:[%s4869_s4 + $0x2] ss:$0 sm:$0xff] }
 0x1f7   : > { %v2184_v10 = vpop.f32.mrf.mxu1 }
 0x1f8   : > { %v2073_v47 = vpop.f32.mrf.mxu0  ;;  %v2089_v17 = vadd.f32 %v2070_v43, %v1965_v15 }
 0x1fa   : > { %v2203_v42 = vadd.f32 %v2184_v10, %v2089_v17  ;;  %v4751_v10 = vld [vmem:[%s4869_s4 + $0x5] ss:$0 sm:$0xff] }
 0x1fd   : > { %v4690_v21 = vpop.f32.mrf.mxu2  ;;  %v1967_v27 = vpop.f32.mrf.mxu3 }
 0x1ff   : > { %v2187_v44 = vpop.f32.mrf.mxu1 }
 0x200   : > { %v2075_v51 = vpop.f32.mrf.mxu0 }
 0x202   : > { %2762 = vmatmul.bf16.gmra.mxu2 %v1993_v53 }
 0x205   : > { %v4692_v13 = vpop.f32.mrf.mxu2  ;;  %v1969_v36 = vpop.f32.mrf.mxu3 }
 0x207   : > { %v4700_v14 = vpop.f32.mrf.mxu1 }
 0x208   : > { %v4704_v61 = vpop.f32.mrf.mxu0 }
 0x20d   : > { %v4694_v46 = vpop.f32.mrf.mxu2  ;;  %v4702_v50 = vpop.f32.mrf.mxu3 }
 0x20f   : > { %v4706_v57 = vpop.f32.mrf.mxu1 }
 0x210   : > { %v4710_v63 = vpop.f32.mrf.mxu0 }
 0x212   : > { %2767 = vmatmul.bf16.gmra.mxu2 %v2678_v8  ;;  %v1968_v8 = vadd.f32 %v1967_v27, %v1890_v28  ;;  %v1754_v28 = vmul.f32 %v4739_v9, %v4658_v6 }
 0x214   : > { %v2090_v35 = vadd.f32 %v2073_v47, %v1968_v8  ;;  %v1763_v6 = vadd.f32 %v4751_v10, %v1754_v28  ;;  %v1973_v8 = vadd.f32 %v4702_v50, %v4692_v13 }
 0x215   : > { %v4696_v59 = vpop.f32.mrf.mxu2  ;;  %v4708_v58 = vpop.f32.mrf.mxu3 }
 0x216   : > { %v2204_v47 = vadd.f32 %v2187_v44, %v2090_v35  ;;  %v1755_v44 = vmul.f32 %v4739_v9, %v4665_v48 }
 0x217   : > { %v4712_v45 = vpop.f32.mrf.mxu1 }
 0x218   : > { %v4716_v60 = vpop.f32.mrf.mxu0 }
 0x21d   : > { %v4698_v49 = vpop.f32.mrf.mxu2  ;;  %v4714_v54 = vpop.f32.mrf.mxu3 }
 0x21f   : > { %v4720_v56 = vpop.f32.mrf.mxu1 }
 0x220   : > { %v4726_v53 = vpop.f32.mrf.mxu0 }
 0x225   : > { %v2296_v55 = vpop.f32.mrf.mxu2  ;;  %v4722_v16 = vpop.f32.mrf.mxu3 }
 0x226   : > { %v2316_v33 = vadd.f32 %v2296_v55, %v2202_v34 }
 0x227   : > { %v4728_v5 = vpop.f32.mrf.mxu1 }
 0x228   : > { %v2525_v3 = vpop.f32.mrf.mxu0 }
 0x22d   : > { %v2298_v38 = vpop.f32.mrf.mxu2  ;;  %v2410_v7 = vpop.f32.mrf.mxu3 }
 0x22e   : > { %v2430_v25 = vadd.f32 %v2410_v7, %v2316_v33  ;;  %v2317_v29 = vadd.f32 %v2298_v38, %v2203_v42  ;;  %v1970_v38 = vadd.f32 %v1969_v36, %v4690_v21 }
 0x22f   : > { %v2639_v19 = vpop.f32.mrf.mxu1 }
 0x230   : > { %v2527_v4 = vpop.f32.mrf.mxu0  ;;  %v2545_v37 = vadd.f32 %v2525_v3, %v2430_v25  ;;  %v2091_v34 = vadd.f32 %v2075_v51, %v1970_v38 }
 0x232   : > { %v2659_v30 = vadd.f32 %v2639_v19, %v2545_v37  ;;  %v4756_v37 = vld [vmem:[%s4869_s4 + $0x3] ss:$0 sm:$0xff]  ;;  %v2205_v42 = vadd.f32 %v4700_v14, %v2091_v34  ;;  %v2092_v14 = vadd.f32 %v4704_v61, %v1973_v8 }
 0x235   : > { %v2301_v0 = vpop.f32.mrf.mxu2  ;;  %v2412_v39 = vpop.f32.mrf.mxu3 }
 0x236   : > { %v2431_v18 = vadd.f32 %v2412_v39, %v2317_v29  ;;  %v2318_v19 = vadd.f32 %v2301_v0, %v2204_v47 }
 0x237   : > { %v2641_v31 = vpop.f32.mrf.mxu1 }
 0x238   : > { %v2530_v43 = vpop.f32.mrf.mxu0  ;;  %v2546_v7 = vadd.f32 %v2527_v4, %v2431_v18 }
 0x23a   : > { %v2660_v15 = vadd.f32 %v2641_v31, %v2546_v7  ;;  %v1764_v31 = vadd.f32 %v4751_v10, %v1755_v44 }
 0x23d   : > { %v4718_v22 = vpop.f32.mrf.mxu2  ;;  %v2415_v20 = vpop.f32.mrf.mxu3 }
 0x23e   : > { %v2432_v33 = vadd.f32 %v2415_v20, %v2318_v19  ;;  %v2319_v48 = vadd.f32 %v4718_v22, %v2205_v42  ;;  %v1975_v22 = vadd.f32 %v4708_v58, %v4694_v46  ;;  %v1757_v58 = vmul.f32 %v4739_v9, %v4677_v52 }
 0x23f   : > { %v2644_v12 = vpop.f32.mrf.mxu1 }
 0x240   : > { %v2532_v4 = vpop.f32.mrf.mxu0  ;;  %v2547_v0 = vadd.f32 %v2530_v43, %v2432_v33  ;;  %v1756_v43 = vmul.f32 %v4739_v9, %v4674_v11  ;;  %v2093_v11 = vadd.f32 %v4710_v63, %v1975_v22 }
 0x242   : > { %v1765_v61 = vadd.f32 %v4751_v10, %v1756_v43  ;;  %v2207_v33 = vadd.f32 %v4712_v45, %v2093_v11 }
 0x245   : > { %v4724_v41 = vpop.f32.mrf.mxu2  ;;  %v2417_v2 = vpop.f32.mrf.mxu3 }
 0x246   : > { %v2433_v13 = vadd.f32 %v2417_v2, %v2319_v48 }
 0x247   : > { %v2646_v20 = vpop.f32.mrf.mxu1 }
 0x248   : > { %v2548_v47 = vadd.f32 %v2532_v4, %v2433_v13  ;;  %v2535_v7 = vpop.f32.mrf.mxu0 }
 0x24a   : > { %v2662_v2 = vadd.f32 %v2646_v20, %v2548_v47 }
 0x24d   : > { %v4730_v1 = vpop.f32.mrf.mxu2  ;;  %v2420_v35 = vpop.f32.mrf.mxu3 }
 0x24e   : > { %v2321_v44 = vadd.f32 %v4730_v1, %v2207_v33  ;;  %v1980_v1 = vadd.f32 %v4722_v16, %v4698_v49  ;;  %v1759_v49 = vmul.f32 %v4739_v9, %v4683_v26 }
 0x255   : > { %v4732_v23 = vpop.f32.mrf.mxu2 }
 0x25d   : > { %v4734_v32 = vpop.f32.mrf.mxu2 }
 0x265   : > { %v2753_v55 = vpop.f32.mrf.mxu2 }
 0x266   : > { %v2773_v27 = vadd.f32 %v2753_v55, %v2659_v30  ;;  %v2661_v30 = vadd.f32 %v2644_v12, %v2547_v0 }
 0x268   : > { %v2782_v3 = vmul.f32 %v4744_v40, %v2773_v27  ;;  %v2206_v27 = vadd.f32 %v4706_v57, %v2092_v14  ;;  %v2649_v57 = vpop.f32.mrf.mxu1  ;;  %v2095_v14 = vadd.f32 %v4726_v53, %v1980_v1  ;;  %v1768_v53 = vadd.f32 %v4751_v10, %v1759_v49 }
 0x26a   : > { %v2791_v39 = vadd.f32 %v4756_v37, %v2782_v3  ;;  %v2320_v12 = vadd.f32 %v4724_v41, %v2206_v27  ;;  %v1978_v41 = vadd.f32 %v4714_v54, %v4696_v59  ;;  %v1758_v59 = vmul.f32 %v4739_v9, %v4679_v62 }
 0x26c   : > { %v2799_v17 = vadd.f32 %v2791_v39, %v1763_v6  ;;  %v2434_v6 = vadd.f32 %v2420_v35, %v2320_v12  ;;  %v2422_v39 = vpop.f32.mrf.mxu3  ;;  %v2094_v52 = vadd.f32 %v4716_v60, %v1978_v41 }
 0x26d   : > { %v2755_v25 = vpop.f32.mrf.mxu2  ;;  %v2435_v42 = vadd.f32 %v2422_v39, %v2321_v44 }
 0x26e   : > { %v2807_v21 = vmax.f32 %v2799_v17, 0.0  ;;  %v2774_v36 = vadd.f32 %v2755_v25, %v2660_v15  ;;  %v2549_v17 = vadd.f32 %v2535_v7, %v2434_v6  ;;  %v1766_v25 = vadd.f32 %v4751_v10, %v1757_v58 }
 0x26f   : > { %v2208_v48 = vadd.f32 %v4720_v56, %v2094_v52 }
 0x270   : > { %2815 = vst [vmem:[%s4768_s16] sm:$0xff] %v2807_v21  ;;  %v2783_v51 = vmul.f32 %v4744_v40, %v2774_v36  ;;  %v2537_v36 = vpop.f32.mrf.mxu0  ;;  %v2663_v4 = vadd.f32 %v2649_v57, %v2549_v17 }
 0x271   : > { %v2550_v20 = vadd.f32 %v2537_v36, %v2435_v42  ;;  %v2322_v35 = vadd.f32 %v4732_v23, %v2208_v48 }
 0x272   : > { %v2792_v29 = vadd.f32 %v4756_v37, %v2783_v51  ;;  %v2651_v51 = vpop.f32.mrf.mxu1 }
 0x274   : > { %v2800_v50 = vadd.f32 %v2792_v29, %v1764_v31  ;;  %v2425_v31 = vpop.f32.mrf.mxu3  ;;  %v1767_v29 = vadd.f32 %v4751_v10, %v1758_v59 }
 0x275   : > { %v2758_v18 = vpop.f32.mrf.mxu2  ;;  %v2436_v13 = vadd.f32 %v2425_v31, %v2322_v35 }
 0x276   : > { %v2808_v55 = vmax.f32 %v2800_v50, 0.0  ;;  %v2775_v28 = vadd.f32 %v2758_v18, %v2661_v30  ;;  %v2664_v30 = vadd.f32 %v2651_v51, %v2550_v20 }
 0x278   : > { %2816 = vst [vmem:[%s4768_s16 + $0x8] sm:$0xff] %v2808_v55  ;;  %v2784_v38 = vmul.f32 %v4744_v40, %v2775_v28  ;;  %v2540_v56 = vpop.f32.mrf.mxu0  ;;  %v2209_v55 = vadd.f32 %v4728_v5, %v2095_v14  ;;  %v1760_v5 = vmul.f32 %v4739_v9, %v4685_v24 }
 0x279   : > { %v2551_v28 = vadd.f32 %v2540_v56, %v2436_v13 }
 0x27a   : > { %v2793_v3 = vadd.f32 %v4756_v37, %v2784_v38  ;;  %v2654_v27 = vpop.f32.mrf.mxu1  ;;  %v2323_v47 = vadd.f32 %v4734_v32, %v2209_v55  ;;  %v1769_v32 = vadd.f32 %v4751_v10, %v1760_v5 }
 0x27b   : > { %v2665_v7 = vadd.f32 %v2654_v27, %v2551_v28 }
 0x27c   : > { %v2801_v19 = vadd.f32 %v2793_v3, %v1765_v61  ;;  %v2427_v22 = vpop.f32.mrf.mxu3 }
 0x27d   : > { %v2760_v46 = vpop.f32.mrf.mxu2  ;;  %v2437_v26 = vadd.f32 %v2427_v22, %v2323_v47 }
 0x27e   : > { %v2809_v34 = vmax.f32 %v2801_v19, 0.0  ;;  %v2776_v15 = vadd.f32 %v2760_v46, %v2662_v2 }
 0x280   : > { %2817 = vst [vmem:[%s4768_s16 + $0x10] sm:$0xff] %v2809_v34  ;;  %v2785_v63 = vmul.f32 %v4744_v40, %v2776_v15  ;;  %v2542_v2 = vpop.f32.mrf.mxu0  ;;  %v4876_v34 = vld [vmem:[#allocation7_spill] sm:$0xff] }
 0x281   : > { %v2552_v6 = vadd.f32 %v2542_v2, %v2437_v26  ;;  %v1761_v15 = vmul.f32 %v4739_v9, %v4876_v34 }
 0x282   : > { %v2794_v21 = vadd.f32 %v4756_v37, %v2785_v63  ;;  %v2656_v39 = vpop.f32.mrf.mxu1 }
 0x283   : > { %v2666_v46 = vadd.f32 %v2656_v39, %v2552_v6  ;;  %v1770_v63 = vadd.f32 %v4751_v10, %v1761_v15 }
 0x284   : > { %v2802_v45 = vadd.f32 %v2794_v21, %v1766_v25 }
 0x285   : > { %v2763_v8 = vpop.f32.mrf.mxu2 }
 0x286   : > { %v2810_v54 = vmax.f32 %v2802_v45, 0.0  ;;  %v2777_v0 = vadd.f32 %v2763_v8, %v2663_v4 }
 0x288   : > { %2818 = vst [vmem:[%s4768_s16 + $0x18] sm:$0xff] %v2810_v54  ;;  %v2786_v60 = vmul.f32 %v4744_v40, %v2777_v0 }
 0x28a   : > { %v2795_v62 = vadd.f32 %v4756_v37, %v2786_v60 }
 0x28c   : > { %v2803_v50 = vadd.f32 %v2795_v62, %v1767_v29 }
 0x28d   : > { %v2765_v18 = vpop.f32.mrf.mxu2 }
 0x28e   : > { %v2811_v16 = vmax.f32 %v2803_v50, 0.0  ;;  %v2778_v43 = vadd.f32 %v2765_v18, %v2664_v30 }
 0x290   : > { %2819 = vst [vmem:[%s4768_s16 + $0x20] sm:$0xff] %v2811_v16  ;;  %v2787_v23 = vmul.f32 %v4744_v40, %v2778_v43 }
 0x292   : > { %v2796_v38 = vadd.f32 %v4756_v37, %v2787_v23 }
 0x294   : > { %v2804_v61 = vadd.f32 %v2796_v38, %v1768_v53 }
 0x295   : > { %v2768_v12 = vpop.f32.mrf.mxu2 }
 0x296   : > { %v2812_v3 = vmax.f32 %v2804_v61, 0.0  ;;  %v2779_v11 = vadd.f32 %v2768_v12, %v2665_v7 }
 0x298   : > { %2820 = vst [vmem:[%s4768_s16 + $0x28] sm:$0xff] %v2812_v3  ;;  %v2788_v57 = vmul.f32 %v4744_v40, %v2779_v11 }
 0x29a   : > { %v2797_v19 = vadd.f32 %v4756_v37, %v2788_v57 }
 0x29c   : > { %v2805_v58 = vadd.f32 %v2797_v19, %v1769_v32 }
 0x29d   : > { %v2770_v24 = vpop.f32.mrf.mxu2 }
 0x29e   : > { %v2813_v33 = vmax.f32 %v2805_v58, 0.0  ;;  %v2780_v41 = vadd.f32 %v2770_v24, %v2666_v46 }
 0x2a0   : > { %2821 = vst [vmem:[%s4768_s16 + $0x30] sm:$0xff] %v2813_v33  ;;  %v2789_v17 = vmul.f32 %v4744_v40, %v2780_v41 }
 0x2a2   : > { %v2798_v25 = vadd.f32 %v4756_v37, %v2789_v17 }
 0x2a4   : > { %v2806_v44 = vadd.f32 %v2798_v25, %v1770_v63 }
 0x2a6   : > { %v2814_v9 = vmax.f32 %v2806_v44, 0.0 }
 0x2a8   : > { %2822 = vst [vmem:[%s4768_s16 + $0x38] sm:$0xff] %v2814_v9 }
 0x2a9   : > { %3756 = shalt.err (!%p3753_p5)
}
 0x2aa   : > { %s3794_s14 = smov 128   ;;  %s3795_s15 = smov 8  }
 0x2ab   : > { %3681 = dma.vmem_to_hbm [thread:$0]  (%p3864_p6), %s2837_s22, 1024, %s2839_s30, %s2824_s6, %s3794_s14, %s3794_s14, %s3795_s15  }
 0x2ac PF: > { %s2853_s16 = sand.u32 1, %s3779_s18   ;;  %p3684_p7 = pnand %p2909_p9, %p3868_p8 }
 0x2ad   : > { %s2854_s26 = scalar_lea.sflag [#allocation5], %s2853_s16 }
 0x2ae   : > { %p3685_p10 = pneg %p3684_p7 }
 0x2b0   : > { %3774 = dma.done.wait (%p3685_p10), %s2854_s26, 1024  }
 0x2b1   : > { %3776 = vsyncadd (%p3685_p10), %s2854_s26, 4294966272  ;;  %p15_p11 = scmp.ge.s32.totalorder %s3849_s24, 4   ;;  %s4877_s18 = smov %s3783_s19 }
 0x2b2   : > { %s4878_s19 = smov %s3787_s20  ;;  %s4879_s20 = smov %s3862_s27 }
 0x2b3   : > { %s4880_s21 = smov %s3849_s24  ;;  %17 = sbr.rel (!%p15_p11) target bundleno = 3 (0x3), region = 144 }
 0x2b8   :  { %2860 = vsyncpa [#allocation5], 1 }
 0x2b9   :  { %2862 = vsyncpa [#allocation5 + $0x1], 1 }

</bundles_post_ra>
